<compile_context>
chip_gen: v7x
topology: tpu7x:2x2x1
jax: 0.10.0
libtpu: 0.0.40
codegen_flags: <defaults>
</compile_context>

<pallas_src>
import numpy as np
import jax
import jax.numpy as jnp
from jax.experimental import pallas as pl
from jax.experimental.pallas import tpu as pltpu


def _gaussian_kernel1d(window_size: int, sigma: float = 1.5) -> np.ndarray:
    # matches kornia.filters.get_gaussian_kernel1d (normalized gaussian)
    x = np.arange(window_size, dtype=np.float64) - window_size // 2
    if window_size % 2 == 0:
        x = x + 0.5
    g = np.exp(-(x ** 2) / (2.0 * sigma ** 2))
    return g / g.sum()


def _reflect_index(k: int, n: int) -> int:
    # PyTorch / jnp 'reflect' padding (mirror without repeating the edge).
    if k < 0:
        k = -k
    if k >= n:
        k = 2 * (n - 1) - k
    return k


def _banded_reflect_matrix(n: int, taps: np.ndarray) -> np.ndarray:
    """M[i, r] = sum of taps[s] with reflect(i + s - p, n) == r.

    (M @ x)[i] == sum_s taps[s] * x[reflect(i + s - p)], i.e. a 'same'
    correlation with the reflect border folded into a constant n x n matrix.
    """
    K = taps.shape[0]
    p = K // 2
    m = np.zeros((n, n), dtype=np.float64)
    for i in range(n):
        for s in range(K):
            m[i, _reflect_index(i + s - p, n)] += taps[s]
    return m


def _make_ssim_kernel(C1: float, C2: float, eps: float):
    def kernel(gv_ref, gh_ref, x1_ref, x2_ref, o_ref):
        gv = gv_ref[...]                       # (R, R) f32 block-diag vertical blur
        gh = gh_ref[...]                       # (W, W) f32 horizontal blur (right-mul)
        x1 = x1_ref[0].astype(jnp.float32)     # (R, W)
        x2 = x2_ref[0].astype(jnp.float32)

        def blur(img):
            # separable Gaussian blur with reflect border, as two MXU matmuls
            t = jnp.dot(gv, img, preferred_element_type=jnp.float32)
            return jnp.dot(t, gh, preferred_element_type=jnp.float32)

        mu1 = blur(x1)
        mu2 = blur(x2)
        m11 = blur(x1 * x1)
        m22 = blur(x2 * x2)
        m12 = blur(x1 * x2)

        mu1_sq = mu1 * mu1
        mu2_sq = mu2 * mu2
        mu1_mu2 = mu1 * mu2

        sigma1_sq = m11 - mu1_sq
        sigma2_sq = m22 - mu2_sq
        sigma12 = m12 - mu1_mu2

        num = (2.0 * mu1_mu2 + C1) * (2.0 * sigma12 + C2)
        den = (mu1_sq + mu2_sq + C1) * (sigma1_sq + sigma2_sq + C2)
        o_ref[0] = (num / (den + eps)).astype(o_ref.dtype)

    return kernel


def ssim_pallas(img1, img2, window_size: int, max_val: float = 1.0,
                eps: float = 1e-12, padding: str = "same"):
    assert img1.shape == img2.shape and img1.ndim == 4
    assert window_size % 2 == 1, "odd window sizes only"
    B, C, H, W = img1.shape
    K = window_size
    p = K // 2
    assert p < H and p < W, "reflect padding requires window_size//2 < H and < W"

    orig_dtype = img1.dtype
    N = B * C

    # Fuse several (b, c) planes per grid step (block-diagonal vertical blur)
    # so tiny images amortize per-step overhead and fill the MXU rows.
    row_cap = 256
    pb = 1
    for cand in range(min(N, max(1, row_cap // H)), 0, -1):
        if N % cand == 0:
            pb = cand
            break
    R = pb * H
    NB = N // pb

    taps = _gaussian_kernel1d(K, 1.5)
    gv = _banded_reflect_matrix(H, taps)              # (H, H), left-multiply
    gh = _banded_reflect_matrix(W, taps).T            # (W, W), right-multiply
    gvb = jnp.asarray(np.kron(np.eye(pb), gv), dtype=jnp.float32)   # (R, R)
    ghj = jnp.asarray(gh, dtype=jnp.float32)                         # (W, W)

    C1 = float((0.01 * max_val) ** 2)
    C2 = float((0.03 * max_val) ** 2)

    # Free (row-major) reshapes; inputs stay in their original dtype.
    x1 = img1.reshape(NB, R, W)
    x2 = img2.reshape(NB, R, W)

    # VMEM budget: double-buffered inputs/outputs + blur matrices + f32 temps.
    itemsize = jnp.dtype(orig_dtype).itemsize
    est = (2 * 2 * R * W * itemsize          # x1/x2 blocks, double-buffered
           + 2 * R * W * itemsize            # output block, double-buffered
           + 2 * (R * R + W * W) * 4         # constant blur matrices
           + 14 * R * W * 4)                 # in-kernel f32 temporaries
    vmem_limit = int(min(128 * 1024 * 1024, max(32 * 1024 * 1024, 2 * est)))

    kernel = _make_ssim_kernel(C1, C2, float(eps))

    out = pl.pallas_call(
        kernel,
        out_shape=jax.ShapeDtypeStruct((NB, R, W), orig_dtype),
        grid=(NB,),
        in_specs=[
            pl.BlockSpec((R, R), lambda i: (0, 0)),        # block-diag Gv
            pl.BlockSpec((W, W), lambda i: (0, 0)),        # Gh
            pl.BlockSpec((1, R, W), lambda i: (i, 0, 0)),  # img1 plane block
            pl.BlockSpec((1, R, W), lambda i: (i, 0, 0)),  # img2 plane block
        ],
        out_specs=pl.BlockSpec((1, R, W), lambda i: (i, 0, 0)),
        compiler_params=pltpu.CompilerParams(
            dimension_semantics=("parallel",),
            vmem_limit_bytes=vmem_limit),
    )(gvb, ghj, x1, x2)

    out = out.reshape(B, C, H, W)
    if padding == "valid":
        # kornia: compute with 'same' filters, then crop the border
        out = out[:, :, p:H - p, p:W - p]
    return out


if __name__ == "__main__":
    key = jax.random.PRNGKey(0)
    k1, k2 = jax.random.split(key)
    img1 = jax.random.uniform(k1, (2, 4, 16, 16), dtype=jnp.float32)
    img2 = jax.random.uniform(k2, (2, 4, 16, 16), dtype=jnp.float32)

    ssim_map = ssim_pallas(img1, img2, window_size=5, max_val=1.0)
    jax.block_until_ready(ssim_map)
    assert ssim_map.shape == (2, 4, 16, 16)
    assert bool(jnp.all(jnp.isfinite(ssim_map)))
    print("KERNEL_OK")
</pallas_src>

<mosaic_0001>
module attributes {stable_mosaic.version = 11 : i64} {
  func.func @kernel(%arg0: i32, %arg1: memref<128x128xf32, #tpu.memory_space<vmem>>, %arg2: memref<16x16xf32, #tpu.memory_space<vmem>>, %arg3: memref<1x128x16xf32, #tpu.memory_space<vmem>>, %arg4: memref<1x128x16xf32, #tpu.memory_space<vmem>>, %arg5: memref<1x128x16xf32, #tpu.memory_space<vmem>>) attributes {dimension_semantics = [#tpu.dimension_semantics<parallel>], iteration_bounds = array<i64: 1>, scalar_prefetch = 0 : i64, scratch_operands = 0 : i64, tpu.core_type = #tpu.core_type<tc>, window_params = [{pipeline_mode = #tpu.pipeline_mode<synchronous>, transform_indices = @transform_0, window_bounds = array<i64: 128, 128>}, {pipeline_mode = #tpu.pipeline_mode<synchronous>, transform_indices = @transform_1, window_bounds = array<i64: 16, 16>}, {transform_indices = @transform_2, window_bounds = array<i64: 1, 128, 16>}, {transform_indices = @transform_3, window_bounds = array<i64: 1, 128, 16>}, {transform_indices = @transform_4, window_bounds = array<i64: 1, 128, 16>}]} {
    %c0 = arith.constant 0 : index
    %c0_0 = arith.constant 0 : index
    %0 = vector.load %arg1[%c0, %c0_0] : memref<128x128xf32, #tpu.memory_space<vmem>>, vector<128x128xf32>
    %c0_1 = arith.constant 0 : index
    %c0_2 = arith.constant 0 : index
    %1 = vector.load %arg2[%c0_1, %c0_2] : memref<16x16xf32, #tpu.memory_space<vmem>>, vector<16x16xf32>
    %c0_3 = arith.constant 0 : index
    %c0_4 = arith.constant 0 : index
    %c0_5 = arith.constant 0 : index
    %2 = vector.load %arg3[%c0_3, %c0_4, %c0_5] : memref<1x128x16xf32, #tpu.memory_space<vmem>>, vector<1x128x16xf32>
    %3 = vector.shape_cast %2 : vector<1x128x16xf32> to vector<128x16xf32>
    %c0_6 = arith.constant 0 : index
    %c0_7 = arith.constant 0 : index
    %c0_8 = arith.constant 0 : index
    %4 = vector.load %arg4[%c0_6, %c0_7, %c0_8] : memref<1x128x16xf32, #tpu.memory_space<vmem>>, vector<1x128x16xf32>
    %5 = vector.shape_cast %4 : vector<1x128x16xf32> to vector<128x16xf32>
    %cst = arith.constant dense<0.000000e+00> : vector<128x16xf32>
    %6 = tpu.matmul %0, %3, %cst {dimension_numbers = #tpu.dot_dimension_numbers<[1], [0], [0], [1], [0, 0, 1, 1], [], []>} : vector<128x128xf32>, vector<128x16xf32>, vector<128x16xf32> -> vector<128x16xf32>
    %cst_9 = arith.constant dense<0.000000e+00> : vector<128x16xf32>
    %7 = tpu.matmul %6, %1, %cst_9 {dimension_numbers = #tpu.dot_dimension_numbers<[1], [0], [0], [1], [0, 0, 1, 1], [], []>} : vector<128x16xf32>, vector<16x16xf32>, vector<128x16xf32> -> vector<128x16xf32>
    %cst_10 = arith.constant dense<0.000000e+00> : vector<128x16xf32>
    %8 = tpu.matmul %0, %5, %cst_10 {dimension_numbers = #tpu.dot_dimension_numbers<[1], [0], [0], [1], [0, 0, 1, 1], [], []>} : vector<128x128xf32>, vector<128x16xf32>, vector<128x16xf32> -> vector<128x16xf32>
    %cst_11 = arith.constant dense<0.000000e+00> : vector<128x16xf32>
    %9 = tpu.matmul %8, %1, %cst_11 {dimension_numbers = #tpu.dot_dimension_numbers<[1], [0], [0], [1], [0, 0, 1, 1], [], []>} : vector<128x16xf32>, vector<16x16xf32>, vector<128x16xf32> -> vector<128x16xf32>
    %10 = arith.mulf %3, %3 : vector<128x16xf32>
    %cst_12 = arith.constant dense<0.000000e+00> : vector<128x16xf32>
    %11 = tpu.matmul %0, %10, %cst_12 {dimension_numbers = #tpu.dot_dimension_numbers<[1], [0], [0], [1], [0, 0, 1, 1], [], []>} : vector<128x128xf32>, vector<128x16xf32>, vector<128x16xf32> -> vector<128x16xf32>
    %cst_13 = arith.constant dense<0.000000e+00> : vector<128x16xf32>
    %12 = tpu.matmul %11, %1, %cst_13 {dimension_numbers = #tpu.dot_dimension_numbers<[1], [0], [0], [1], [0, 0, 1, 1], [], []>} : vector<128x16xf32>, vector<16x16xf32>, vector<128x16xf32> -> vector<128x16xf32>
    %13 = arith.mulf %5, %5 : vector<128x16xf32>
    %cst_14 = arith.constant dense<0.000000e+00> : vector<128x16xf32>
    %14 = tpu.matmul %0, %13, %cst_14 {dimension_numbers = #tpu.dot_dimension_numbers<[1], [0], [0], [1], [0, 0, 1, 1], [], []>} : vector<128x128xf32>, vector<128x16xf32>, vector<128x16xf32> -> vector<128x16xf32>
    %cst_15 = arith.constant dense<0.000000e+00> : vector<128x16xf32>
    %15 = tpu.matmul %14, %1, %cst_15 {dimension_numbers = #tpu.dot_dimension_numbers<[1], [0], [0], [1], [0, 0, 1, 1], [], []>} : vector<128x16xf32>, vector<16x16xf32>, vector<128x16xf32> -> vector<128x16xf32>
    %16 = arith.mulf %3, %5 : vector<128x16xf32>
    %cst_16 = arith.constant dense<0.000000e+00> : vector<128x16xf32>
    %17 = tpu.matmul %0, %16, %cst_16 {dimension_numbers = #tpu.dot_dimension_numbers<[1], [0], [0], [1], [0, 0, 1, 1], [], []>} : vector<128x128xf32>, vector<128x16xf32>, vector<128x16xf32> -> vector<128x16xf32>
    %cst_17 = arith.constant dense<0.000000e+00> : vector<128x16xf32>
    %18 = tpu.matmul %17, %1, %cst_17 {dimension_numbers = #tpu.dot_dimension_numbers<[1], [0], [0], [1], [0, 0, 1, 1], [], []>} : vector<128x16xf32>, vector<16x16xf32>, vector<128x16xf32> -> vector<128x16xf32>
    %19 = arith.mulf %7, %7 : vector<128x16xf32>
    %20 = arith.mulf %9, %9 : vector<128x16xf32>
    %21 = arith.mulf %7, %9 : vector<128x16xf32>
    %22 = arith.subf %12, %19 : vector<128x16xf32>
    %23 = arith.subf %15, %20 : vector<128x16xf32>
    %24 = arith.subf %18, %21 : vector<128x16xf32>
    %cst_18 = arith.constant 2.000000e+00 : f32
    %25 = vector.broadcast %cst_18 : f32 to vector<128x16xf32>
    %26 = arith.mulf %25, %21 : vector<128x16xf32>
    %cst_19 = arith.constant 9.99999974E-5 : f32
    %27 = vector.broadcast %cst_19 : f32 to vector<128x16xf32>
    %28 = arith.addf %26, %27 : vector<128x16xf32>
    %cst_20 = arith.constant 2.000000e+00 : f32
    %29 = vector.broadcast %cst_20 : f32 to vector<128x16xf32>
    %30 = arith.mulf %29, %24 : vector<128x16xf32>
    %cst_21 = arith.constant 8.99999984E-4 : f32
    %31 = vector.broadcast %cst_21 : f32 to vector<128x16xf32>
    %32 = arith.addf %30, %31 : vector<128x16xf32>
    %33 = arith.mulf %28, %32 : vector<128x16xf32>
    %34 = arith.addf %19, %20 : vector<128x16xf32>
    %cst_22 = arith.constant 9.99999974E-5 : f32
    %35 = vector.broadcast %cst_22 : f32 to vector<128x16xf32>
    %36 = arith.addf %34, %35 : vector<128x16xf32>
    %37 = arith.addf %22, %23 : vector<128x16xf32>
    %cst_23 = arith.constant 8.99999984E-4 : f32
    %38 = vector.broadcast %cst_23 : f32 to vector<128x16xf32>
    %39 = arith.addf %37, %38 : vector<128x16xf32>
    %40 = arith.mulf %36, %39 : vector<128x16xf32>
    %cst_24 = arith.constant 9.99999996E-13 : f32
    %41 = vector.broadcast %cst_24 : f32 to vector<128x16xf32>
    %42 = arith.addf %40, %41 : vector<128x16xf32>
    %43 = arith.divf %33, %42 : vector<128x16xf32>
    %c0_25 = arith.constant 0 : index
    %c0_26 = arith.constant 0 : index
    %c0_27 = arith.constant 0 : index
    %44 = vector.load %arg5[%c0_25, %c0_26, %c0_27] : memref<1x128x16xf32, #tpu.memory_space<vmem>>, vector<1x128x16xf32>
    %45 = vector.shape_cast %44 : vector<1x128x16xf32> to vector<128x16xf32>
    %46 = vector.shape_cast %43 : vector<128x16xf32> to vector<1x128x16xf32>
    tpu.vector_store %arg5[%c0_25, %c0_26, %c0_27], %46 {strides = array<i32>} : memref<1x128x16xf32, #tpu.memory_space<vmem>>, vector<1x128x16xf32>,
    return
  }
  func.func @transform_0(%arg0: i32) -> (i32, i32) {
    %c0_i32 = arith.constant 0 : i32
    %c0_i32_0 = arith.constant 0 : i32
    %c0_i32_1 = arith.constant 0 : i32
    return %c0_i32, %c0_i32_0 : i32, i32
  }
  func.func @transform_1(%arg0: i32) -> (i32, i32) {
    %c0_i32 = arith.constant 0 : i32
    %c0_i32_0 = arith.constant 0 : i32
    %c0_i32_1 = arith.constant 0 : i32
    return %c0_i32, %c0_i32_0 : i32, i32
  }
  func.func @transform_2(%arg0: i32) -> (i32, i32, i32) {
    %c0_i32 = arith.constant 0 : i32
    %c0_i32_0 = arith.constant 0 : i32
    %c0_i32_1 = arith.constant 0 : i32
    return %arg0, %c0_i32, %c0_i32_0 : i32, i32, i32
  }
  func.func @transform_3(%arg0: i32) -> (i32, i32, i32) {
    %c0_i32 = arith.constant 0 : i32
    %c0_i32_0 = arith.constant 0 : i32
    %c0_i32_1 = arith.constant 0 : i32
    return %arg0, %c0_i32, %c0_i32_0 : i32, i32, i32
  }
  func.func @transform_4(%arg0: i32) -> (i32, i32, i32) {
    %c0_i32 = arith.constant 0 : i32
    %c0_i32_0 = arith.constant 0 : i32
    %c0_i32_1 = arith.constant 0 : i32
    return %arg0, %c0_i32, %c0_i32_0 : i32, i32, i32
  }
}

</mosaic_0001>

<bundles_post_ra>
// kernel: tpu_custom_call.1
= control target key start
LH: loop header
LB: loop body
LE: loop exit
PB: predicated region body
PF: predicated region fallthrough
CT: control target
= control target key end

     0   :  { %vm212_vm0 = vcmask 130048   ;;  %s4174_s2 = inlined_call_operand.vmem [shape: f32[1,128,16], index: 2, kind: input, shape index: {}]   ;;  %s4175_s0 = inlined_call_operand.vmem [shape: f32[128,128], index: 0, kind: input, shape index: {}]   ;;  %s4176_s1 = inlined_call_operand.vmem [shape: f32[16,16], index: 1, kind: input, shape index: {}]   ;;  %s4177_s3 = inlined_call_operand.vmem [shape: f32[1,128,16], index: 3, kind: input, shape index: {}]   ;;  %s4178_s4 = inlined_call_operand.vmem [shape: f32[1,128,16], index: 4, kind: output, shape index: {}]  }
   0x1   :  { %v3122_v0 = vld [vmem:[%s4174_s2] sm:$0xff]  ;;  %v3127_v1 = vld [vmem:[%s4174_s2 + $0x8] sm:$0xff]  ;;  %v3132_v2 = vld [vmem:[%s4174_s2 + $0x10] sm:$0xff] }
   0x2   :  { %v2880_v3 = vpack.c.bf16 %v3127_v1, %v3122_v0  ;;  %v3139_v4 = vld [vmem:[%s4174_s2 + $0x18] sm:$0xff]  ;;  %v3146_v6 = vld [vmem:[%s4174_s2 + $0x20] sm:$0xff]  ;;  %v3151_v7 = vld [vmem:[%s4174_s2 + $0x28] sm:$0xff] }
   0x3   :  { %v2884_v5 = vpack.c.bf16 %v3139_v4, %v3132_v2  ;;  %v2888_v8 = vpack.c.bf16 %v3151_v7, %v3146_v6  ;;  %v3158_v9 = vld [vmem:[%s4175_s0] sm:$0xff]  ;;  %v3163_v10 = vld [vmem:[%s4174_s2 + $0x30] sm:$0xff]  ;;  %v3168_v11 = vld [vmem:[%s4174_s2 + $0x38] sm:$0xff] }
   0x4   :  { %2881 = vmatprep.subr.bf16.mxu0 %v2880_v3  ;;  %2492 = vmatprep.mubr.f32.mxu0 %v3158_v9  ;;  %v2892_v12 = vpack.c.bf16 %v3168_v11, %v3163_v10  ;;  %v3176_v13 = vld [vmem:[%s4174_s2 + $0x40] sm:$0xff]  ;;  %v3181_v14 = vld [vmem:[%s4174_s2 + $0x48] sm:$0xff]  ;;  %v3196_v19 = vld [vmem:[%s4174_s2 + $0x50] sm:$0xff] }
   0x5   :  { %2883 = vmatpush3.bf16.msra.mxu0 %v2880_v3  ;;  %v33_v15 = vld [vmem:[%s4176_s1] sm:$0xff]  ;;  %v34_v16 = vld [vmem:[%s4176_s1 + $0x8] sm:$0xff]  ;;  %v2896_v18 = vpack.c.bf16 %v3181_v14, %v3176_v13  ;;  %v3201_v20 = vld [vmem:[%s4174_s2 + $0x58] sm:$0xff] }
   0x6   :  { %2885 = vmatprep.subr.bf16.mxu0 %v2884_v5  ;;  %v3189_v17 = vpack.c.bf16 %v34_v16, %v33_v15  ;;  %v2900_v21 = vpack.c.bf16 %v3201_v20, %v3196_v19  ;;  %v3210_v22 = vld [vmem:[%s4174_s2 + $0x60] sm:$0xff]  ;;  %v3215_v23 = vld [vmem:[%s4174_s2 + $0x68] sm:$0xff]  ;;  %v3222_v25 = vld [vmem:[%s4174_s2 + $0x70] sm:$0xff] }
   0x7   :  { %v2904_v24 = vpack.c.bf16 %v3215_v23, %v3210_v22  ;;  %v3227_v26 = vld [vmem:[%s4174_s2 + $0x78] sm:$0xff]  ;;  %v3234_v28 = vld [vmem:[%s4175_s0 + $0x8] sm:$0xff]  ;;  %v3239_v29 = vld [vmem:[%s4175_s0 + $0x10] sm:$0xff] }
   0x8   :  { %2913 = vmatprep.subr.bf16.mxu1 %v3189_v17  ;;  %v2908_v27 = vpack.c.bf16 %v3227_v26, %v3222_v25  ;;  %v3247_v30 = vld [vmem:[%s4175_s0 + $0x18] sm:$0xff]  ;;  %v3253_v31 = vld [vmem:[%s4175_s0 + $0x20] sm:$0xff]  ;;  %v3261_v32 = vld [vmem:[%s4175_s0 + $0x28] sm:$0xff] }
   0x9   :  { %2887 = vmatpush3.bf16.msra.mxu0 %v2884_v5  ;;  %2915 = vmatpush3.bf16.msra.mxu1 %v3189_v17  ;;  %v3266_v33 = vld [vmem:[%s4175_s0 + $0x30] sm:$0xff]  ;;  %v3273_v34 = vld [vmem:[%s4175_s0 + $0x38] sm:$0xff]  ;;  %v3278_v35 = vld [vmem:[%s4175_s0 + $0x40] sm:$0xff] }
   0xa   :  { %2889 = vmatprep.subr.bf16.mxu0 %v2888_v8  ;;  %v3285_v36 = vld [vmem:[%s4175_s0 + $0x48] sm:$0xff]  ;;  %v3290_v37 = vld [vmem:[%s4175_s0 + $0x50] sm:$0xff]  ;;  %v3297_v38 = vld [vmem:[%s4175_s0 + $0x58] sm:$0xff] }
   0xb   :  { %v3302_v39 = vld [vmem:[%s4175_s0 + $0x60] sm:$0xff]  ;;  %v3309_v40 = vld [vmem:[%s4175_s0 + $0x68] sm:$0xff]  ;;  %v3314_v41 = vld [vmem:[%s4175_s0 + $0x70] sm:$0xff] }
   0xc   :  { %v3321_v42 = vld [vmem:[%s4175_s0 + $0x78] sm:$0xff]  ;;  %v3327_v43 = vld [vmem:[%s4177_s3] sm:$0xff]  ;;  %v3332_v44 = vld [vmem:[%s4177_s3 + $0x8] sm:$0xff] }
   0xd   :  { %2891 = vmatpush3.bf16.msra.mxu0 %v2888_v8  ;;  %v2916_v45 = vpack.c.bf16 %v3332_v44, %v3327_v43  ;;  %v3339_v46 = vld [vmem:[%s4177_s3 + $0x10] sm:$0xff]  ;;  %v3344_v47 = vld [vmem:[%s4177_s3 + $0x18] sm:$0xff]  ;;  %v3352_v51 = vld [vmem:[%s4177_s3 + $0x20] sm:$0xff] }
   0xe   :  { %2893 = vmatprep.subr.bf16.mxu0 %v2892_v12  ;;  %v2920_v50 = vpack.c.bf16 %v3344_v47, %v3339_v46  ;;  %v3357_v52 = vld [vmem:[%s4177_s3 + $0x28] sm:$0xff]  ;;  %v3366_v56 = vld [vmem:[%s4177_s3 + $0x30] sm:$0xff]  ;;  %v3371_v57 = vld [vmem:[%s4177_s3 + $0x38] sm:$0xff] }
   0xf   :  { %2917 = vmatprep.subr.bf16.mxu1 %v2916_v45  ;;  %v2924_v55 = vpack.c.bf16 %v3357_v52, %v3352_v51  ;;  %v2928_v60 = vpack.c.bf16 %v3371_v57, %v3366_v56  ;;  %v3380_v61 = vld [vmem:[%s4177_s3 + $0x40] sm:$0xff]  ;;  %v3385_v62 = vld [vmem:[%s4177_s3 + $0x48] sm:$0xff]  ;;  %v3394_v8 = vld [vmem:[%s4177_s3 + $0x50] sm:$0xff] }
  0x10   :  { %v2932_v5 = vpack.c.bf16 %v3385_v62, %v3380_v61 }
  0x11   :  { %2895 = vmatpush3.bf16.msra.mxu0 %v2892_v12  ;;  %v3399_v12 = vld [vmem:[%s4177_s3 + $0x58] sm:$0xff] }
  0x12   :  { %2897 = vmatprep.subr.bf16.mxu0 %v2896_v18 }
  0x15   :  { %2899 = vmatpush3.bf16.msra.mxu0 %v2896_v18  ;;  %v2936_v18 = vpack.c.bf16 %v3399_v12, %v3394_v8 }
  0x16   :  { %2901 = vmatprep.subr.bf16.mxu0 %v2900_v21 }
  0x19   :  { %2903 = vmatpush3.bf16.msra.mxu0 %v2900_v21  ;;  %v3408_v21 = vld [vmem:[%s4177_s3 + $0x60] sm:$0xff] }
  0x1a   :  { %2905 = vmatprep.subr.bf16.mxu0 %v2904_v24 }
  0x1d   :  { %2907 = vmatpush3.bf16.msra.mxu0 %v2904_v24  ;;  %v3413_v24 = vld [vmem:[%s4177_s3 + $0x68] sm:$0xff] }
  0x1e   :  { %2909 = vmatprep.subr.bf16.mxu0 %v2908_v27 }
  0x21   :  { %2911 = vmatpush3.bf16.msra.mxu0 %v2908_v27 }
  0x22   :  { %2949 = vmatprep.subr.bf16.mxu0 %v3189_v17 }
  0x24   :  { %2493 = vmatmul.mubr.f32.vlgmr.msra.gmra.mrb[0].mxu0 %v3234_v28 }
  0x25   :  { %2495 = vmatprep.mubr.f32.mxu0 %v3239_v29  ;;  %2951 = vmatpush3.bf16.msra.mxu0 %v3189_v17 }
  0x26   :  { %2985 = vmatprep.subr.bf16.mxu0 %v3189_v17 }
  0x28   :  { %2496 = vmatmul.mubr.f32.gmra.mrb[2].mxu0 %v3247_v30 }
  0x29   :  { %2498 = vmatprep.mubr.f32.mxu0 %v3253_v31 }
  0x2c   :  { %2499 = vmatmul.mubr.f32.gmra.mrb[4].mxu0 %v3261_v32 }
  0x2d   :  { %2501 = vmatprep.mubr.f32.mxu0 %v3266_v33 }
  0x30   :  { %2502 = vmatmul.mubr.f32.gmra.mrb[6].mxu0 %v3273_v34 }
  0x31   :  { %2504 = vmatprep.mubr.f32.mxu0 %v3278_v35 }
  0x34   :  { %2505 = vmatmul.mubr.f32.gmra.mrb[8].mxu0 %v3285_v36 }
  0x35   :  { %2507 = vmatprep.mubr.f32.mxu0 %v3290_v37 }
  0x38   :  { %2508 = vmatmul.mubr.f32.gmra.mrb[10].mxu0 %v3297_v38 }
  0x39   :  { %2510 = vmatprep.mubr.f32.mxu0 %v3302_v39 }
  0x3c   :  { %2511 = vmatmul.mubr.f32.gmra.mrb[12].mxu0 %v3309_v40 }
  0x3d   :  { %2513 = vmatprep.mubr.f32.mxu0 %v3314_v41 }
  0x40   :  { %2514 = vmatmul.mubr.f32.gmra.mrb[14].mxu0 %v3321_v42 }
  0xf7   :  { %v2494_v48 = vpop.f32.mrb[0].mxu0 }
  0xf8   :  { %v133_v49 = vpop.f32.mrb[1].mxu0 }
  0xf9   :  { %2520 = vmatprep.mubr.msk.f32.mxu1 %vm212_vm0, %v133_v49  ;;  %v3422_v49 = vld [vmem:[%s4177_s3 + $0x70] sm:$0xff] }
  0xfa   :  { %2521 = vmatmul.mubr.msk.f32.vlgmr.msra.gmra.mrb[0].mxu1 %vm212_vm0, %v2494_v48  ;;  %v2940_v48 = vpack.c.bf16 %v3413_v24, %v3408_v21 }
  0xfb   :  { %2919 = vmatpush3.bf16.msra.mxu1 %v2916_v45  ;;  %v2497_v53 = vpop.f32.mrb[2].mxu0 }
  0xfc   :  { %v143_v54 = vpop.f32.mrb[3].mxu0  ;;  %2921 = vmatprep.subr.bf16.mxu1 %v2920_v50 }
  0xfd   :  { %2523 = vmatprep.mubr.msk.f32.mxu1 %vm212_vm0, %v143_v54 }
  0xfe   :  { %2524 = vmatmul.mubr.msk.f32.gmra.mrb[2].mxu1 %vm212_vm0, %v2497_v53 }
  0xff   :  { %2923 = vmatpush3.bf16.msra.mxu1 %v2920_v50  ;;  %v2500_v58 = vpop.f32.mrb[4].mxu0  ;;  %v3427_v50 = vld [vmem:[%s4177_s3 + $0x78] sm:$0xff] }
 0x100   :  { %v153_v59 = vpop.f32.mrb[5].mxu0  ;;  %2925 = vmatprep.subr.bf16.mxu1 %v2924_v55 }
 0x101   :  { %2526 = vmatprep.mubr.msk.f32.mxu1 %vm212_vm0, %v153_v59  ;;  %v745_v59 = vmul.f32 %v3127_v1, %v3127_v1 }
 0x102   :  { %2527 = vmatmul.mubr.msk.f32.gmra.mrb[4].mxu1 %vm212_vm0, %v2500_v58  ;;  %v744_v58 = vmul.f32 %v3122_v0, %v3122_v0 }
 0x103   :  { %2927 = vmatpush3.bf16.msra.mxu1 %v2924_v55  ;;  %v2503_v63 = vpop.f32.mrb[6].mxu0  ;;  %v2944_v55 = vpack.c.bf16 %v3427_v50, %v3422_v49 }
 0x104   :  { %v163_v3 = vpop.f32.mrb[7].mxu0  ;;  %2929 = vmatprep.subr.bf16.mxu1 %v2928_v60 }
 0x105   :  { %2529 = vmatprep.mubr.msk.f32.mxu1 %vm212_vm0, %v163_v3  ;;  %v2952_v3 = vpack.c.bf16 %v745_v59, %v744_v58  ;;  %v753_v58 = vmul.f32 %v3181_v14, %v3181_v14 }
 0x106   :  { %2530 = vmatmul.mubr.msk.f32.gmra.mrb[6].mxu1 %vm212_vm0, %v2503_v63 }
 0x107   :  { %2931 = vmatpush3.bf16.msra.mxu1 %v2928_v60  ;;  %v2506_v15 = vpop.f32.mrb[8].mxu0 }
 0x108   :  { %v173_v16 = vpop.f32.mrb[9].mxu0  ;;  %2933 = vmatprep.subr.bf16.mxu1 %v2932_v5 }
 0x109   :  { %2532 = vmatprep.mubr.msk.f32.mxu1 %vm212_vm0, %v173_v16 }
 0x10a   :  { %2533 = vmatmul.mubr.msk.f32.gmra.mrb[8].mxu1 %vm212_vm0, %v2506_v15  ;;  %v747_v15 = vmul.f32 %v3139_v4, %v3139_v4 }
 0x10b   :  { %2935 = vmatpush3.bf16.msra.mxu1 %v2932_v5  ;;  %v2509_v27 = vpop.f32.mrb[10].mxu0  ;;  %v746_v5 = vmul.f32 %v3132_v2, %v3132_v2 }
 0x10c   :  { %v183_v45 = vpop.f32.mrb[11].mxu0  ;;  %2937 = vmatprep.subr.bf16.mxu1 %v2936_v18 }
 0x10d   :  { %2535 = vmatprep.mubr.msk.f32.mxu1 %vm212_vm0, %v183_v45  ;;  %v2956_v16 = vpack.c.bf16 %v747_v15, %v746_v5  ;;  %v756_v5 = vmul.f32 %v3210_v22, %v3210_v22  ;;  %v757_v15 = vmul.f32 %v3215_v23, %v3215_v23 }
 0x10e   :  { %2536 = vmatmul.mubr.msk.f32.gmra.mrb[10].mxu1 %vm212_vm0, %v2509_v27  ;;  %v749_v27 = vmul.f32 %v3151_v7, %v3151_v7 }
 0x10f   :  { %2939 = vmatpush3.bf16.msra.mxu1 %v2936_v18  ;;  %v2512_v53 = vpop.f32.mrb[12].mxu0  ;;  %v748_v18 = vmul.f32 %v3146_v6, %v3146_v6 }
 0x110   :  { %v193_v54 = vpop.f32.mrb[13].mxu0  ;;  %2941 = vmatprep.subr.bf16.mxu1 %v2940_v48 }
 0x111   :  { %2538 = vmatprep.mubr.msk.f32.mxu1 %vm212_vm0, %v193_v54  ;;  %v2960_v45 = vpack.c.bf16 %v749_v27, %v748_v18  ;;  %v758_v18 = vmul.f32 %v3222_v25, %v3222_v25  ;;  %v759_v27 = vmul.f32 %v3227_v26, %v3227_v26 }
 0x112   :  { %2539 = vmatmul.mubr.msk.f32.gmra.mrb[12].mxu1 %vm212_vm0, %v2512_v53  ;;  %v751_v53 = vmul.f32 %v3168_v11, %v3168_v11 }
 0x113   :  { %2943 = vmatpush3.bf16.msra.mxu1 %v2940_v48  ;;  %v2515_v60 = vpop.f32.mrb[14].mxu0  ;;  %v750_v48 = vmul.f32 %v3163_v10, %v3163_v10 }
 0x114   :  { %v203_v63 = vpop.f32.mrb[15].mxu0  ;;  %2945 = vmatprep.subr.bf16.mxu1 %v2944_v55 }
 0x115   :  { %2541 = vmatprep.mubr.msk.f32.mxu1 %vm212_vm0, %v203_v63  ;;  %v2964_v54 = vpack.c.bf16 %v751_v53, %v750_v48  ;;  %v755_v63 = vmul.f32 %v3201_v20, %v3201_v20  ;;  %v1098_v48 = vmul.f32 %v3327_v43, %v3327_v43  ;;  %v1099_v53 = vmul.f32 %v3332_v44, %v3332_v44 }
 0x116   :  { %2542 = vmatmul.mubr.msk.f32.gmra.mrb[14].mxu1 %vm212_vm0, %v2515_v60  ;;  %v754_v60 = vmul.f32 %v3196_v19, %v3196_v19 }
 0x117   :  { %2947 = vmatpush3.bf16.msra.mxu1 %v2944_v55  ;;  %2576 = vmatprep.mubr.f32.mxu1 %v3158_v9  ;;  %v752_v55 = vmul.f32 %v3176_v13, %v3176_v13 }
 0x118   :  { %2953 = vmatprep.subr.bf16.mxu1 %v2952_v3 }
 0x119   :  { %v2968_v59 = vpack.c.bf16 %v753_v58, %v752_v55  ;;  %v1100_v55 = vmul.f32 %v3339_v46, %v3339_v46  ;;  %v1101_v58 = vmul.f32 %v3344_v47, %v3344_v47 }
 0x11a   :  { %2577 = vmatmul.mubr.f32.vlgmr.msra.gmra.mrb[16].mxu1 %v3234_v28 }
 0x11b   :  { %2955 = vmatpush3.bf16.msra.mxu1 %v2952_v3  ;;  %2579 = vmatprep.mubr.f32.mxu1 %v3239_v29  ;;  %v2972_v3 = vpack.c.bf16 %v755_v63, %v754_v60  ;;  %v1102_v60 = vmul.f32 %v3352_v51, %v3352_v51  ;;  %v1103_v63 = vmul.f32 %v3357_v52, %v3357_v52 }
 0x11c   :  { %2957 = vmatprep.subr.bf16.mxu1 %v2956_v16 }
 0x11e   :  { %2580 = vmatmul.mubr.f32.gmra.mrb[18].mxu1 %v3247_v30 }
 0x11f   :  { %2959 = vmatpush3.bf16.msra.mxu1 %v2956_v16  ;;  %2582 = vmatprep.mubr.f32.mxu1 %v3253_v31  ;;  %v2976_v16 = vpack.c.bf16 %v757_v15, %v756_v5  ;;  %v1104_v5 = vmul.f32 %v3366_v56, %v3366_v56  ;;  %v1105_v15 = vmul.f32 %v3371_v57, %v3371_v57 }
 0x120   :  { %2961 = vmatprep.subr.bf16.mxu1 %v2960_v45 }
 0x122   :  { %2583 = vmatmul.mubr.f32.gmra.mrb[20].mxu1 %v3261_v32 }
 0x123   :  { %2963 = vmatpush3.bf16.msra.mxu1 %v2960_v45  ;;  %2585 = vmatprep.mubr.f32.mxu1 %v3266_v33  ;;  %v2980_v45 = vpack.c.bf16 %v759_v27, %v758_v18  ;;  %v1106_v18 = vmul.f32 %v3380_v61, %v3380_v61  ;;  %v1107_v27 = vmul.f32 %v3385_v62, %v3385_v62 }
 0x124   :  { %2965 = vmatprep.subr.bf16.mxu1 %v2964_v54 }
 0x126   :  { %2586 = vmatmul.mubr.f32.gmra.mrb[22].mxu1 %v3273_v34 }
 0x127   :  { %2967 = vmatpush3.bf16.msra.mxu1 %v2964_v54  ;;  %2588 = vmatprep.mubr.f32.mxu1 %v3278_v35  ;;  %v2988_v54 = vpack.c.bf16 %v1099_v53, %v1098_v48  ;;  %v1108_v48 = vmul.f32 %v3394_v8, %v3394_v8  ;;  %v1109_v53 = vmul.f32 %v3399_v12, %v3399_v12 }
 0x128   :  { %2969 = vmatprep.subr.bf16.mxu1 %v2968_v59 }
 0x12a   :  { %2589 = vmatmul.mubr.f32.gmra.mrb[24].mxu1 %v3285_v36 }
 0x12b   :  { %2971 = vmatpush3.bf16.msra.mxu1 %v2968_v59  ;;  %2591 = vmatprep.mubr.f32.mxu1 %v3290_v37  ;;  %v2992_v59 = vpack.c.bf16 %v1101_v58, %v1100_v55  ;;  %v1110_v55 = vmul.f32 %v3408_v21, %v3408_v21  ;;  %v1111_v58 = vmul.f32 %v3413_v24, %v3413_v24 }
 0x12c   :  { %2973 = vmatprep.subr.bf16.mxu1 %v2972_v3 }
 0x12e   :  { %2592 = vmatmul.mubr.f32.gmra.mrb[26].mxu1 %v3297_v38 }
 0x12f   :  { %2975 = vmatpush3.bf16.msra.mxu1 %v2972_v3  ;;  %2594 = vmatprep.mubr.f32.mxu1 %v3302_v39  ;;  %v2996_v3 = vpack.c.bf16 %v1103_v63, %v1102_v60  ;;  %v1112_v60 = vmul.f32 %v3422_v49, %v3422_v49  ;;  %v1113_v63 = vmul.f32 %v3427_v50, %v3427_v50 }
 0x130   :  { %2977 = vmatprep.subr.bf16.mxu1 %v2976_v16 }
 0x132   :  { %2595 = vmatmul.mubr.f32.gmra.mrb[28].mxu1 %v3309_v40 }
 0x133   :  { %2979 = vmatpush3.bf16.msra.mxu1 %v2976_v16  ;;  %2597 = vmatprep.mubr.f32.mxu1 %v3314_v41  ;;  %v3000_v16 = vpack.c.bf16 %v1105_v15, %v1104_v5  ;;  %v1452_v5 = vmul.f32 %v3327_v43, %v3122_v0  ;;  %v1453_v15 = vmul.f32 %v3332_v44, %v3127_v1 }
 0x134   :  { %2981 = vmatprep.subr.bf16.mxu1 %v2980_v45  ;;  %v1456_v1 = vmul.f32 %v3352_v51, %v3146_v6  ;;  %v1457_v43 = vmul.f32 %v3357_v52, %v3151_v7  ;;  %v1459_v44 = vmul.f32 %v3371_v57, %v3168_v11  ;;  %v1460_v7 = vmul.f32 %v3380_v61, %v3176_v13 }
 0x135   :  { %v1462_v11 = vmul.f32 %v3394_v8, %v3196_v19  ;;  %v1465_v51 = vmul.f32 %v3413_v24, %v3215_v23  ;;  %v1467_v52 = vmul.f32 %v3427_v50, %v3227_v26 }
 0x136   :  { %2598 = vmatmul.mubr.f32.gmra.mrb[30].mxu1 %v3321_v42 }
 0x137   :  { %2983 = vmatpush3.bf16.msra.mxu1 %v2980_v45  ;;  %2660 = vmatprep.mubr.f32.mxu1 %v3158_v9  ;;  %v3004_v45 = vpack.c.bf16 %v1107_v27, %v1106_v18  ;;  %v1454_v18 = vmul.f32 %v3339_v46, %v3132_v2  ;;  %v1455_v27 = vmul.f32 %v3344_v47, %v3139_v4 }
 0x138   :  { %2989 = vmatprep.subr.bf16.mxu1 %v2988_v54  ;;  %v3032_v2 = vpack.c.bf16 %v1457_v43, %v1456_v1  ;;  %v1458_v4 = vmul.f32 %v3366_v56, %v3163_v10  ;;  %v1461_v46 = vmul.f32 %v3385_v62, %v3181_v14  ;;  %v1463_v47 = vmul.f32 %v3399_v12, %v3201_v20 }
 0x139   :  { %v3028_v0 = vpack.c.bf16 %v1455_v27, %v1454_v18  ;;  %v1464_v14 = vmul.f32 %v3408_v21, %v3210_v22  ;;  %v1466_v20 = vmul.f32 %v3422_v49, %v3222_v25 }
 0x13a   :  { %2661 = vmatmul.mubr.f32.vlgmr.msra.gmra.mrb[32].mxu1 %v3234_v28  ;;  %v3036_v6 = vpack.c.bf16 %v1459_v44, %v1458_v4  ;;  %v3040_v10 = vpack.c.bf16 %v1461_v46, %v1460_v7  ;;  %v3044_v13 = vpack.c.bf16 %v1463_v47, %v1462_v11 }
 0x13b   :  { %2991 = vmatpush3.bf16.msra.mxu1 %v2988_v54  ;;  %2663 = vmatprep.mubr.f32.mxu1 %v3239_v29  ;;  %v3008_v54 = vpack.c.bf16 %v1109_v53, %v1108_v48  ;;  %v3048_v19 = vpack.c.bf16 %v1465_v51, %v1464_v14  ;;  %v3052_v22 = vpack.c.bf16 %v1467_v52, %v1466_v20 }
 0x13c   :  { %2993 = vmatprep.subr.bf16.mxu1 %v2992_v59 }
 0x13e   :  { %2664 = vmatmul.mubr.f32.gmra.mrb[34].mxu1 %v3247_v30 }
 0x13f   :  { %2995 = vmatpush3.bf16.msra.mxu1 %v2992_v59  ;;  %2666 = vmatprep.mubr.f32.mxu1 %v3253_v31  ;;  %v3012_v59 = vpack.c.bf16 %v1111_v58, %v1110_v55 }
 0x140   :  { %2997 = vmatprep.subr.bf16.mxu1 %v2996_v3 }
 0x142   :  { %2667 = vmatmul.mubr.f32.gmra.mrb[36].mxu1 %v3261_v32 }
 0x143   :  { %2999 = vmatpush3.bf16.msra.mxu1 %v2996_v3  ;;  %2669 = vmatprep.mubr.f32.mxu1 %v3266_v33  ;;  %v3016_v3 = vpack.c.bf16 %v1113_v63, %v1112_v60 }
 0x144   :  { %3001 = vmatprep.subr.bf16.mxu1 %v3000_v16 }
 0x146   :  { %2670 = vmatmul.mubr.f32.gmra.mrb[38].mxu1 %v3273_v34 }
 0x147   :  { %3003 = vmatpush3.bf16.msra.mxu1 %v3000_v16  ;;  %2672 = vmatprep.mubr.f32.mxu1 %v3278_v35  ;;  %v3024_v16 = vpack.c.bf16 %v1453_v15, %v1452_v5 }
 0x148   :  { %3005 = vmatprep.subr.bf16.mxu1 %v3004_v45 }
 0x14a   :  { %2673 = vmatmul.mubr.f32.gmra.mrb[40].mxu1 %v3285_v36 }
 0x14b   :  { %3007 = vmatpush3.bf16.msra.mxu1 %v3004_v45  ;;  %2675 = vmatprep.mubr.f32.mxu1 %v3290_v37 }
 0x14c   :  { %3009 = vmatprep.subr.bf16.mxu1 %v3008_v54 }
 0x14e   :  { %2676 = vmatmul.mubr.f32.gmra.mrb[42].mxu1 %v3297_v38 }
 0x14f   :  { %3011 = vmatpush3.bf16.msra.mxu1 %v3008_v54  ;;  %2678 = vmatprep.mubr.f32.mxu1 %v3302_v39 }
 0x150   :  { %3013 = vmatprep.subr.bf16.mxu1 %v3012_v59 }
 0x152   :  { %2679 = vmatmul.mubr.f32.gmra.mrb[44].mxu1 %v3309_v40 }
 0x153   :  { %3015 = vmatpush3.bf16.msra.mxu1 %v3012_v59  ;;  %2681 = vmatprep.mubr.f32.mxu1 %v3314_v41 }
 0x154   :  { %3017 = vmatprep.subr.bf16.mxu1 %v3016_v3 }
 0x156   :  { %2682 = vmatmul.mubr.f32.gmra.mrb[46].mxu1 %v3321_v42 }
 0x157   :  { %3019 = vmatpush3.bf16.msra.mxu1 %v3016_v3  ;;  %2744 = vmatprep.mubr.f32.mxu1 %v3158_v9 }
 0x158   :  { %3025 = vmatprep.subr.bf16.mxu1 %v3024_v16 }
 0x15a   :  { %2745 = vmatmul.mubr.f32.vlgmr.msra.gmra.mrb[48].mxu1 %v3234_v28 }
 0x15b   :  { %3027 = vmatpush3.bf16.msra.mxu1 %v3024_v16  ;;  %2747 = vmatprep.mubr.f32.mxu1 %v3239_v29 }
 0x15c   :  { %3029 = vmatprep.subr.bf16.mxu1 %v3028_v0 }
 0x15e   :  { %2748 = vmatmul.mubr.f32.gmra.mrb[50].mxu1 %v3247_v30 }
 0x15f   :  { %3031 = vmatpush3.bf16.msra.mxu1 %v3028_v0  ;;  %2750 = vmatprep.mubr.f32.mxu1 %v3253_v31 }
 0x160   :  { %3033 = vmatprep.subr.bf16.mxu1 %v3032_v2 }
 0x162   :  { %2751 = vmatmul.mubr.f32.gmra.mrb[52].mxu1 %v3261_v32 }
 0x163   :  { %3035 = vmatpush3.bf16.msra.mxu1 %v3032_v2  ;;  %2753 = vmatprep.mubr.f32.mxu1 %v3266_v33 }
 0x164   :  { %3037 = vmatprep.subr.bf16.mxu1 %v3036_v6 }
 0x166   :  { %2754 = vmatmul.mubr.f32.gmra.mrb[54].mxu1 %v3273_v34 }
 0x167   :  { %3039 = vmatpush3.bf16.msra.mxu1 %v3036_v6  ;;  %2756 = vmatprep.mubr.f32.mxu1 %v3278_v35 }
 0x168   :  { %3041 = vmatprep.subr.bf16.mxu1 %v3040_v10 }
 0x16a   :  { %2757 = vmatmul.mubr.f32.gmra.mrb[56].mxu1 %v3285_v36 }
 0x16b   :  { %3043 = vmatpush3.bf16.msra.mxu1 %v3040_v10  ;;  %2759 = vmatprep.mubr.f32.mxu1 %v3290_v37 }
 0x16c   :  { %3045 = vmatprep.subr.bf16.mxu1 %v3044_v13 }
 0x16e   :  { %2760 = vmatmul.mubr.f32.gmra.mrb[58].mxu1 %v3297_v38 }
 0x16f   :  { %3047 = vmatpush3.bf16.msra.mxu1 %v3044_v13  ;;  %2762 = vmatprep.mubr.f32.mxu1 %v3302_v39 }
 0x170   :  { %3049 = vmatprep.subr.bf16.mxu1 %v3048_v19 }
 0x172   :  { %2763 = vmatmul.mubr.f32.gmra.mrb[60].mxu1 %v3309_v40 }
 0x173   :  { %3051 = vmatpush3.bf16.msra.mxu1 %v3048_v19  ;;  %2765 = vmatprep.mubr.f32.mxu1 %v3314_v41 }
 0x174   :  { %3053 = vmatprep.subr.bf16.mxu1 %v3052_v22 }
 0x176   :  { %2766 = vmatmul.mubr.f32.gmra.mrb[62].mxu1 %v3321_v42 }
 0x177   :  { %3055 = vmatpush3.bf16.msra.mxu1 %v3052_v22  ;;  %2828 = vmatprep.mubr.f32.mxu1 %v3158_v9 }
 0x178   :  { %3060 = vmatprep.subr.bf16.mxu1 %v3189_v17 }
 0x17a   :  { %2829 = vmatmul.mubr.f32.vlgmr.msra.gmra.mrb[64].mxu1 %v3234_v28 }
 0x17b   :  { %2831 = vmatprep.mubr.f32.mxu1 %v3239_v29  ;;  %3061 = vmatpush3.bf16.msra.mxu1 %v3189_v17 }
 0x17e   :  { %2832 = vmatmul.mubr.f32.gmra.mrb[66].mxu1 %v3247_v30 }
 0x17f   :  { %2834 = vmatprep.mubr.f32.mxu1 %v3253_v31 }
 0x182   :  { %2835 = vmatmul.mubr.f32.gmra.mrb[68].mxu1 %v3261_v32 }
 0x183   :  { %2837 = vmatprep.mubr.f32.mxu1 %v3266_v33 }
 0x186   :  { %2838 = vmatmul.mubr.f32.gmra.mrb[70].mxu1 %v3273_v34 }
 0x187   :  { %2840 = vmatprep.mubr.f32.mxu1 %v3278_v35 }
 0x18a   :  { %2841 = vmatmul.mubr.f32.gmra.mrb[72].mxu1 %v3285_v36 }
 0x18b   :  { %2843 = vmatprep.mubr.f32.mxu1 %v3290_v37 }
 0x18e   :  { %2844 = vmatmul.mubr.f32.gmra.mrb[74].mxu1 %v3297_v38 }
 0x18f   :  { %2846 = vmatprep.mubr.f32.mxu1 %v3302_v39 }
 0x192   :  { %2847 = vmatmul.mubr.f32.gmra.mrb[76].mxu1 %v3309_v40 }
 0x193   :  { %2849 = vmatprep.mubr.f32.mxu1 %v3314_v41 }
 0x196   :  { %2850 = vmatmul.mubr.f32.gmra.mrb[78].mxu1 %v3321_v42 }
 0x1cd   :  { %v3598_v9 = vpop.f32.mrb[0].mxu1 }
 0x1ce   :  { %v3600_v23 = vpop.f32.mrb[1].mxu1 }
 0x1d1   :  { %v3602_v25 = vpop.f32.mrb[2].mxu1 }
 0x1d2   :  { %v3604_v26 = vpop.f32.mrb[3].mxu1 }
 0x1d5   :  { %v3606_v28 = vpop.f32.mrb[4].mxu1 }
 0x1d6   :  { %v3608_v29 = vpop.f32.mrb[5].mxu1 }
 0x1d9   :  { %v3610_v30 = vpop.f32.mrb[6].mxu1 }
 0x1da   :  { %v3612_v31 = vpop.f32.mrb[7].mxu1 }
 0x1dd   :  { %v3614_v32 = vpop.f32.mrb[8].mxu1 }
 0x1de   :  { %v3616_v33 = vpop.f32.mrb[9].mxu1 }
 0x1e1   :  { %v3618_v34 = vpop.f32.mrb[10].mxu1 }
 0x1e2   :  { %v3620_v35 = vpop.f32.mrb[11].mxu1 }
 0x1e5   :  { %v3622_v36 = vpop.f32.mrb[12].mxu1 }
 0x1e6   :  { %v3624_v37 = vpop.f32.mrb[13].mxu1 }
 0x1e9   :  { %v3626_v38 = vpop.f32.mrb[14].mxu1 }
 0x1ea   :  { %v3628_v39 = vpop.f32.mrb[15].mxu1 }
 0x1ed   :  { %v2578_v40 = vpop.f32.mrb[16].mxu1 }
 0x1ee   :  { %v472_v41 = vpop.f32.mrb[17].mxu1 }
 0x1ef   :  { %2604 = vmatprep.mubr.msk.f32.mxu0 %vm212_vm0, %v472_v41 }
 0x1f0   :  { %2605 = vmatmul.mubr.msk.f32.vlgmr.msra.gmra.mrb[16].mxu0 %vm212_vm0, %v2578_v40 }
 0x1f1   :  { %v2581_v42 = vpop.f32.mrb[18].mxu1  ;;  %2987 = vmatpush3.bf16.msra.mxu0 %v3189_v17 }
 0x1f2   :  { %v482_v56 = vpop.f32.mrb[19].mxu1  ;;  %3021 = vmatprep.subr.bf16.mxu0 %v3189_v17 }
 0x1f3   :  { %2607 = vmatprep.mubr.msk.f32.mxu0 %vm212_vm0, %v482_v56 }
 0x1f4   :  { %2608 = vmatmul.mubr.msk.f32.gmra.mrb[18].mxu0 %vm212_vm0, %v2581_v42 }
 0x1f5   :  { %v2584_v57 = vpop.f32.mrb[20].mxu1 }
 0x1f6   :  { %v492_v61 = vpop.f32.mrb[21].mxu1 }
 0x1f7   :  { %2610 = vmatprep.mubr.msk.f32.mxu0 %vm212_vm0, %v492_v61 }
 0x1f8   :  { %2611 = vmatmul.mubr.msk.f32.gmra.mrb[20].mxu0 %vm212_vm0, %v2584_v57 }
 0x1f9   :  { %v2587_v62 = vpop.f32.mrb[22].mxu1 }
 0x1fa   :  { %v502_v8 = vpop.f32.mrb[23].mxu1 }
 0x1fb   :  { %2613 = vmatprep.mubr.msk.f32.mxu0 %vm212_vm0, %v502_v8 }
 0x1fc   :  { %2614 = vmatmul.mubr.msk.f32.gmra.mrb[22].mxu0 %vm212_vm0, %v2587_v62 }
 0x1fd   :  { %v2590_v12 = vpop.f32.mrb[24].mxu1 }
 0x1fe   :  { %v512_v21 = vpop.f32.mrb[25].mxu1 }
 0x1ff   :  { %2616 = vmatprep.mubr.msk.f32.mxu0 %vm212_vm0, %v512_v21 }
 0x200   :  { %2617 = vmatmul.mubr.msk.f32.gmra.mrb[24].mxu0 %vm212_vm0, %v2590_v12 }
 0x201   :  { %v2593_v24 = vpop.f32.mrb[26].mxu1 }
 0x202   :  { %v522_v49 = vpop.f32.mrb[27].mxu1 }
 0x203   :  { %2619 = vmatprep.mubr.msk.f32.mxu0 %vm212_vm0, %v522_v49 }
 0x204   :  { %2620 = vmatmul.mubr.msk.f32.gmra.mrb[26].mxu0 %vm212_vm0, %v2593_v24 }
 0x205   :  { %v2596_v50 = vpop.f32.mrb[28].mxu1 }
 0x206   :  { %v532_v45 = vpop.f32.mrb[29].mxu1 }
 0x207   :  { %2622 = vmatprep.mubr.msk.f32.mxu0 %vm212_vm0, %v532_v45 }
 0x208   :  { %2623 = vmatmul.mubr.msk.f32.gmra.mrb[28].mxu0 %vm212_vm0, %v2596_v50 }
 0x209   :  { %v2599_v48 = vpop.f32.mrb[30].mxu1 }
 0x20a   :  { %v542_v53 = vpop.f32.mrb[31].mxu1 }
 0x20b   :  { %2625 = vmatprep.mubr.msk.f32.mxu0 %vm212_vm0, %v542_v53 }
 0x20c   :  { %2626 = vmatmul.mubr.msk.f32.gmra.mrb[30].mxu0 %vm212_vm0, %v2599_v48 }
 0x20d   :  { %v2662_v54 = vpop.f32.mrb[32].mxu1 }
 0x20e   :  { %v826_v55 = vpop.f32.mrb[33].mxu1 }
 0x20f   :  { %2688 = vmatprep.mubr.msk.f32.mxu0 %vm212_vm0, %v826_v55  ;;  %v3701_v55 = vmul.f32 %v3598_v9, %v3598_v9 }
 0x210   :  { %2689 = vmatmul.mubr.msk.f32.vlgmr.msra.gmra.mrb[32].mxu0 %vm212_vm0, %v2662_v54 }
 0x211   :  { %v2665_v58 = vpop.f32.mrb[34].mxu1  ;;  %3023 = vmatpush3.bf16.msra.mxu0 %v3189_v17 }
 0x212   :  { %v836_v59 = vpop.f32.mrb[35].mxu1  ;;  %3057 = vmatprep.subr.bf16.mxu0 %v3189_v17 }
 0x213   :  { %2691 = vmatprep.mubr.msk.f32.mxu0 %vm212_vm0, %v836_v59 }
 0x214   :  { %2692 = vmatmul.mubr.msk.f32.gmra.mrb[34].mxu0 %vm212_vm0, %v2665_v58 }
 0x215   :  { %v2668_v60 = vpop.f32.mrb[36].mxu1 }
 0x216   :  { %v846_v63 = vpop.f32.mrb[37].mxu1 }
 0x217   :  { %2694 = vmatprep.mubr.msk.f32.mxu0 %vm212_vm0, %v846_v63  ;;  %v3710_v63 = vmul.f32 %v3600_v23, %v3600_v23 }
 0x218   :  { %2695 = vmatmul.mubr.msk.f32.gmra.mrb[36].mxu0 %vm212_vm0, %v2668_v60 }
 0x219   :  { %v2671_v3 = vpop.f32.mrb[38].mxu1 }
 0x21a   :  { %v856_v5 = vpop.f32.mrb[39].mxu1 }
 0x21b   :  { %2697 = vmatprep.mubr.msk.f32.mxu0 %vm212_vm0, %v856_v5 }
 0x21c   :  { %2698 = vmatmul.mubr.msk.f32.gmra.mrb[38].mxu0 %vm212_vm0, %v2671_v3 }
 0x21d   :  { %v2674_v15 = vpop.f32.mrb[40].mxu1 }
 0x21e   :  { %v866_v16 = vpop.f32.mrb[41].mxu1 }
 0x21f   :  { %2700 = vmatprep.mubr.msk.f32.mxu0 %vm212_vm0, %v866_v16 }
 0x220   :  { %2701 = vmatmul.mubr.msk.f32.gmra.mrb[40].mxu0 %vm212_vm0, %v2674_v15 }
 0x221   :  { %v2677_v18 = vpop.f32.mrb[42].mxu1 }
 0x222   :  { %v876_v27 = vpop.f32.mrb[43].mxu1 }
 0x223   :  { %2703 = vmatprep.mubr.msk.f32.mxu0 %vm212_vm0, %v876_v27 }
 0x224   :  { %2704 = vmatmul.mubr.msk.f32.gmra.mrb[42].mxu0 %vm212_vm0, %v2677_v18  ;;  %v3727_v18 = vmul.f32 %v3602_v25, %v3602_v25 }
 0x225   :  { %v2680_v0 = vpop.f32.mrb[44].mxu1 }
 0x226   :  { %v886_v1 = vpop.f32.mrb[45].mxu1 }
 0x227   :  { %2706 = vmatprep.mubr.msk.f32.mxu0 %vm212_vm0, %v886_v1  ;;  %v3736_v1 = vmul.f32 %v3604_v26, %v3604_v26 }
 0x228   :  { %2707 = vmatmul.mubr.msk.f32.gmra.mrb[44].mxu0 %vm212_vm0, %v2680_v0 }
 0x229   :  { %v2683_v43 = vpop.f32.mrb[46].mxu1 }
 0x22a   :  { %v896_v2 = vpop.f32.mrb[47].mxu1 }
 0x22b   :  { %2709 = vmatprep.mubr.msk.f32.mxu0 %vm212_vm0, %v896_v2 }
 0x22c   :  { %2710 = vmatmul.mubr.msk.f32.gmra.mrb[46].mxu0 %vm212_vm0, %v2683_v43 }
 0x22d   :  { %v2746_v4 = vpop.f32.mrb[48].mxu1 }
 0x22e   :  { %v1180_v44 = vpop.f32.mrb[49].mxu1 }
 0x22f   :  { %2772 = vmatprep.mubr.msk.f32.mxu0 %vm212_vm0, %v1180_v44 }
 0x230   :  { %2773 = vmatmul.mubr.msk.f32.vlgmr.msra.gmra.mrb[48].mxu0 %vm212_vm0, %v2746_v4 }
 0x231   :  { %v2749_v6 = vpop.f32.mrb[50].mxu1  ;;  %3059 = vmatpush3.bf16.msra.mxu0 %v3189_v17 }
 0x232   :  { %v1190_v7 = vpop.f32.mrb[51].mxu1 }
 0x233   :  { %2775 = vmatprep.mubr.msk.f32.mxu0 %vm212_vm0, %v1190_v7 }
 0x234   :  { %2776 = vmatmul.mubr.msk.f32.gmra.mrb[50].mxu0 %vm212_vm0, %v2749_v6  ;;  %v3753_v6 = vmul.f32 %v3606_v28, %v3606_v28 }
 0x235   :  { %v2752_v46 = vpop.f32.mrb[52].mxu1 }
 0x236   :  { %v1200_v10 = vpop.f32.mrb[53].mxu1 }
 0x237   :  { %2778 = vmatprep.mubr.msk.f32.mxu0 %vm212_vm0, %v1200_v10  ;;  %v3762_v10 = vmul.f32 %v3608_v29, %v3608_v29 }
 0x238   :  { %2779 = vmatmul.mubr.msk.f32.gmra.mrb[52].mxu0 %vm212_vm0, %v2752_v46 }
 0x239   :  { %v2755_v11 = vpop.f32.mrb[54].mxu1 }
 0x23a   :  { %v1210_v47 = vpop.f32.mrb[55].mxu1 }
 0x23b   :  { %2781 = vmatprep.mubr.msk.f32.mxu0 %vm212_vm0, %v1210_v47 }
 0x23c   :  { %2782 = vmatmul.mubr.msk.f32.gmra.mrb[54].mxu0 %vm212_vm0, %v2755_v11 }
 0x23d   :  { %v2758_v13 = vpop.f32.mrb[56].mxu1 }
 0x23e   :  { %v1220_v14 = vpop.f32.mrb[57].mxu1 }
 0x23f   :  { %2784 = vmatprep.mubr.msk.f32.mxu0 %vm212_vm0, %v1220_v14 }
 0x240   :  { %2785 = vmatmul.mubr.msk.f32.gmra.mrb[56].mxu0 %vm212_vm0, %v2758_v13 }
 0x241   :  { %v2761_v17 = vpop.f32.mrb[58].mxu1 }
 0x242   :  { %v1230_v51 = vpop.f32.mrb[59].mxu1 }
 0x243   :  { %2787 = vmatprep.mubr.msk.f32.mxu0 %vm212_vm0, %v1230_v51 }
 0x244   :  { %2788 = vmatmul.mubr.msk.f32.gmra.mrb[58].mxu0 %vm212_vm0, %v2761_v17  ;;  %v3779_v17 = vmul.f32 %v3610_v30, %v3610_v30 }
 0x245   :  { %v2764_v19 = vpop.f32.mrb[60].mxu1 }
 0x246   :  { %v1240_v20 = vpop.f32.mrb[61].mxu1 }
 0x247   :  { %2790 = vmatprep.mubr.msk.f32.mxu0 %vm212_vm0, %v1240_v20  ;;  %v3788_v20 = vmul.f32 %v3612_v31, %v3612_v31 }
 0x248   :  { %2791 = vmatmul.mubr.msk.f32.gmra.mrb[60].mxu0 %vm212_vm0, %v2764_v19 }
 0x249   :  { %v2767_v52 = vpop.f32.mrb[62].mxu1 }
 0x24a   :  { %v1250_v22 = vpop.f32.mrb[63].mxu1 }
 0x24b   :  { %2793 = vmatprep.mubr.msk.f32.mxu0 %vm212_vm0, %v1250_v22 }
 0x24c   :  { %2794 = vmatmul.mubr.msk.f32.gmra.mrb[62].mxu0 %vm212_vm0, %v2767_v52 }
 0x24d   :  { %v2830_v40 = vpop.f32.mrb[64].mxu1 }
 0x24e   :  { %v1534_v41 = vpop.f32.mrb[65].mxu1 }
 0x24f   :  { %2856 = vmatprep.mubr.msk.f32.mxu0 %vm212_vm0, %v1534_v41 }
 0x250   :  { %2857 = vmatmul.mubr.msk.f32.vlgmr.msra.gmra.mrb[64].mxu0 %vm212_vm0, %v2830_v40 }
 0x251   :  { %v2833_v42 = vpop.f32.mrb[66].mxu1 }
 0x252   :  { %v1544_v56 = vpop.f32.mrb[67].mxu1 }
 0x253   :  { %2859 = vmatprep.mubr.msk.f32.mxu0 %vm212_vm0, %v1544_v56 }
 0x254   :  { %2860 = vmatmul.mubr.msk.f32.gmra.mrb[66].mxu0 %vm212_vm0, %v2833_v42  ;;  %v3805_v42 = vmul.f32 %v3614_v32, %v3614_v32 }
 0x255   :  { %v2836_v57 = vpop.f32.mrb[68].mxu1 }
 0x256   :  { %v1554_v61 = vpop.f32.mrb[69].mxu1 }
 0x257   :  { %2862 = vmatprep.mubr.msk.f32.mxu0 %vm212_vm0, %v1554_v61  ;;  %v3814_v61 = vmul.f32 %v3616_v33, %v3616_v33 }
 0x258   :  { %2863 = vmatmul.mubr.msk.f32.gmra.mrb[68].mxu0 %vm212_vm0, %v2836_v57 }
 0x259   :  { %v2839_v62 = vpop.f32.mrb[70].mxu1 }
 0x25a   :  { %v1564_v8 = vpop.f32.mrb[71].mxu1 }
 0x25b   :  { %2865 = vmatprep.mubr.msk.f32.mxu0 %vm212_vm0, %v1564_v8 }
 0x25c   :  { %2866 = vmatmul.mubr.msk.f32.gmra.mrb[70].mxu0 %vm212_vm0, %v2839_v62 }
 0x25d   :  { %v2842_v12 = vpop.f32.mrb[72].mxu1 }
 0x25e   :  { %v1574_v21 = vpop.f32.mrb[73].mxu1 }
 0x25f   :  { %2868 = vmatprep.mubr.msk.f32.mxu0 %vm212_vm0, %v1574_v21 }
 0x260   :  { %2869 = vmatmul.mubr.msk.f32.gmra.mrb[72].mxu0 %vm212_vm0, %v2842_v12 }
 0x261   :  { %v2845_v24 = vpop.f32.mrb[74].mxu1 }
 0x262   :  { %v1584_v49 = vpop.f32.mrb[75].mxu1 }
 0x263   :  { %2871 = vmatprep.mubr.msk.f32.mxu1 %vm212_vm0, %v1584_v49 }
 0x264   :  { %2872 = vmatmul.mubr.msk.f32.vlgmr.msra.gmra.mrb[80].mxu1 %vm212_vm0, %v2845_v24  ;;  %v3831_v24 = vmul.f32 %v3618_v34, %v3618_v34 }
 0x265   :  { %v2848_v50 = vpop.f32.mrb[76].mxu1 }
 0x266   :  { %v1594_v45 = vpop.f32.mrb[77].mxu1 }
 0x267   :  { %2874 = vmatprep.mubr.msk.f32.mxu1 %vm212_vm0, %v1594_v45  ;;  %v3840_v45 = vmul.f32 %v3620_v35, %v3620_v35 }
 0x268   :  { %2875 = vmatmul.mubr.msk.f32.gmra.mrb[82].mxu1 %vm212_vm0, %v2848_v50 }
 0x269   :  { %v2851_v48 = vpop.f32.mrb[78].mxu1 }
 0x26a   :  { %v1604_v53 = vpop.f32.mrb[79].mxu1 }
 0x26b   :  { %2877 = vmatprep.mubr.msk.f32.mxu1 %vm212_vm0, %v1604_v53 }
 0x26c   :  { %2878 = vmatmul.mubr.msk.f32.gmra.mrb[84].mxu1 %vm212_vm0, %v2851_v48 }
 0x2c3   :  { %v2606_v54 = vpop.f32.mrb[16].mxu0 }
 0x2c4   :  { %v3703_v58 = vmul.f32 %v2606_v54, %v2606_v54  ;;  %v3706_v59 = vmul.f32 %v2606_v54, %v3598_v9  ;;  %v665_v60 = vpop.f32.mrb[17].mxu0 }
 0x2c5   :  { %v3712_v3 = vmul.f32 %v665_v60, %v665_v60  ;;  %v3715_v5 = vmul.f32 %v665_v60, %v3600_v23 }
 0x2c6   :  { %v3719_v15 = vadd.f32 %v3703_v58, %v3701_v55 }
 0x2c7   :  { %v3723_v16 = vadd.f32 %v3712_v3, %v3710_v63  ;;  %v2609_v9 = vpop.f32.mrb[18].mxu0 }
 0x2c8   :  { %v3729_v27 = vmul.f32 %v2609_v9, %v2609_v9  ;;  %v3732_v0 = vmul.f32 %v2609_v9, %v3602_v25  ;;  %v675_v23 = vpop.f32.mrb[19].mxu0  ;;  %v3857_v9 = vmul.f32 %v3622_v36, %v3622_v36 }
 0x2c9   :  { %v3738_v43 = vmul.f32 %v675_v23, %v675_v23  ;;  %v3741_v2 = vmul.f32 %v675_v23, %v3604_v26 }
 0x2ca   :  { %v3745_v4 = vadd.f32 %v3729_v27, %v3727_v18 }
 0x2cb   :  { %v3749_v44 = vadd.f32 %v3738_v43, %v3736_v1  ;;  %v2612_v25 = vpop.f32.mrb[20].mxu0 }
 0x2cc   :  { %v3755_v7 = vmul.f32 %v2612_v25, %v2612_v25  ;;  %v3758_v46 = vmul.f32 %v2612_v25, %v3606_v28  ;;  %v685_v26 = vpop.f32.mrb[21].mxu0 }
 0x2cd   :  { %v3764_v11 = vmul.f32 %v685_v26, %v685_v26  ;;  %v3767_v47 = vmul.f32 %v685_v26, %v3608_v29  ;;  %v3866_v26 = vmul.f32 %v3624_v37, %v3624_v37 }
 0x2ce   :  { %4198 = vst [vmem:[#allocation2_spill] sm:$0xff] %v3758_v46  ;;  %v3771_v13 = vadd.f32 %v3755_v7, %v3753_v6 }
 0x2cf   :  { %4199 = vst [vmem:[#allocation3_spill] sm:$0xff] %v3767_v47  ;;  %v3775_v14 = vadd.f32 %v3764_v11, %v3762_v10  ;;  %v2615_v28 = vpop.f32.mrb[22].mxu0  ;;  %4207 = vst [vmem:[#allocation11_spill] sm:$0xff] %v3866_v26 }
 0x2d0   :  { %v3781_v51 = vmul.f32 %v2615_v28, %v2615_v28  ;;  %v3784_v19 = vmul.f32 %v2615_v28, %v3610_v30  ;;  %v695_v29 = vpop.f32.mrb[23].mxu0 }
 0x2d1   :  { %v3790_v52 = vmul.f32 %v695_v29, %v695_v29  ;;  %v3793_v22 = vmul.f32 %v695_v29, %v3612_v31 }
 0x2d2   :  { %4200 = vst [vmem:[#allocation4_spill] sm:$0xff] %v3784_v19  ;;  %v3797_v40 = vadd.f32 %v3781_v51, %v3779_v17 }
 0x2d3   :  { %4201 = vst [vmem:[#allocation5_spill] sm:$0xff] %v3793_v22  ;;  %v3801_v41 = vadd.f32 %v3790_v52, %v3788_v20  ;;  %v2618_v30 = vpop.f32.mrb[24].mxu0 }
 0x2d4   :  { %v3807_v56 = vmul.f32 %v2618_v30, %v2618_v30  ;;  %v3810_v57 = vmul.f32 %v2618_v30, %v3614_v32  ;;  %v705_v31 = vpop.f32.mrb[25].mxu0 }
 0x2d5   :  { %v3816_v62 = vmul.f32 %v705_v31, %v705_v31  ;;  %v3819_v8 = vmul.f32 %v705_v31, %v3616_v33 }
 0x2d6   :  { %4202 = vst [vmem:[#allocation6_spill] sm:$0xff] %v3810_v57  ;;  %v3823_v12 = vadd.f32 %v3807_v56, %v3805_v42 }
 0x2d7   :  { %4203 = vst [vmem:[#allocation7_spill] sm:$0xff] %v3819_v8  ;;  %v3827_v21 = vadd.f32 %v3816_v62, %v3814_v61  ;;  %v2621_v32 = vpop.f32.mrb[26].mxu0 }
 0x2d8   :  { %v3833_v49 = vmul.f32 %v2621_v32, %v2621_v32  ;;  %v3836_v50 = vmul.f32 %v2621_v32, %v3618_v34  ;;  %v715_v33 = vpop.f32.mrb[27].mxu0  ;;  %v3883_v32 = vmul.f32 %v3626_v38, %v3626_v38 }
 0x2d9   :  { %v3842_v48 = vmul.f32 %v715_v33, %v715_v33  ;;  %v3845_v53 = vmul.f32 %v715_v33, %v3620_v35 }
 0x2da   :  { %4204 = vst [vmem:[#allocation8_spill] sm:$0xff] %v3836_v50  ;;  %v3849_v54 = vadd.f32 %v3833_v49, %v3831_v24  ;;  %4211 = vst [vmem:[#allocation15_spill] sm:$0xff] %v3883_v32 }
 0x2db   :  { %4205 = vst [vmem:[#allocation9_spill] sm:$0xff] %v3845_v53  ;;  %v3853_v60 = vadd.f32 %v3842_v48, %v3840_v45  ;;  %v2624_v34 = vpop.f32.mrb[28].mxu0 }
 0x2dc   :  { %v3859_v23 = vmul.f32 %v2624_v34, %v2624_v34  ;;  %v3862_v25 = vmul.f32 %v2624_v34, %v3622_v36  ;;  %v725_v35 = vpop.f32.mrb[29].mxu0 }
 0x2dd   :  { %v3868_v28 = vmul.f32 %v725_v35, %v725_v35  ;;  %v3871_v29 = vmul.f32 %v725_v35, %v3624_v37  ;;  %v3892_v35 = vmul.f32 %v3628_v39, %v3628_v39 }
 0x2de   :  { %4206 = vst [vmem:[#allocation10_spill] sm:$0xff] %v3862_v25  ;;  %v3875_v30 = vadd.f32 %v3859_v23, %v3857_v9 }
 0x2df   :  { %4208 = vst [vmem:[#allocation12_spill] sm:$0xff] %v3871_v29  ;;  %v3879_v31 = vadd.f32 %v3868_v28, %v3866_v26  ;;  %v2627_v36 = vpop.f32.mrb[30].mxu0  ;;  %4214 = vst [vmem:[#allocation18_spill] sm:$0xff] %v3892_v35 }
 0x2e0   :  { %4209 = vst [vmem:[#allocation13_spill] sm:$0xff] %v3875_v30  ;;  %v3885_v33 = vmul.f32 %v2627_v36, %v2627_v36  ;;  %v3888_v34 = vmul.f32 %v2627_v36, %v3626_v38  ;;  %v735_v37 = vpop.f32.mrb[31].mxu0 }
 0x2e1   :  { %4210 = vst [vmem:[#allocation14_spill] sm:$0xff] %v3879_v31  ;;  %v3894_v29 = vmul.f32 %v735_v37, %v735_v37  ;;  %v3897_v25 = vmul.f32 %v735_v37, %v3628_v39 }
 0x2e2   :  { %4212 = vst [vmem:[#allocation16_spill] sm:$0xff] %v3885_v33  ;;  %4213 = vst [vmem:[#allocation17_spill] sm:$0xff] %v3888_v34  ;;  %v3901_v53 = vadd.f32 %v3885_v33, %v3883_v32  ;;  %v1998_v32 = vadd.f32 0.0001, %v3723_v16 }
 0x2e3   :  { %4215 = vst [vmem:[#allocation19_spill] sm:$0xff] %v3894_v29  ;;  %4216 = vst [vmem:[#allocation20_spill] sm:$0xff] %v3897_v25  ;;  %v3905_v50 = vadd.f32 %v3894_v29, %v3892_v35  ;;  %v2690_v38 = vpop.f32.mrb[32].mxu0 }
 0x2e4   :  { %4217 = vst [vmem:[#allocation21_spill] sm:$0xff] %v3901_v53  ;;  %v1855_v36 = vsub.f32 %v2690_v38, %v3701_v55  ;;  %v1019_v34 = vpop.f32.mrb[33].mxu0 }
 0x2e5   :  { %4218 = vst [vmem:[#allocation22_spill] sm:$0xff] %v3905_v50  ;;  %v1854_v8 = vsub.f32 %v1019_v34, %v3710_v63 }
 0x2e7   :  { %v2693_v57 = vpop.f32.mrb[34].mxu0 }
 0x2e8   :  { %v1857_v22 = vsub.f32 %v2693_v57, %v3727_v18  ;;  %v1029_v19 = vpop.f32.mrb[35].mxu0 }
 0x2e9   :  { %v1856_v39 = vsub.f32 %v1029_v19, %v3736_v1 }
 0x2eb   :  { %v2696_v37 = vpop.f32.mrb[36].mxu0 }
 0x2ec   :  { %v1859_v25 = vsub.f32 %v2696_v37, %v3753_v6  ;;  %v1039_v53 = vpop.f32.mrb[37].mxu0 }
 0x2ed   :  { %v1858_v33 = vsub.f32 %v1039_v53, %v3762_v10 }
 0x2ef   :  { %v2699_v29 = vpop.f32.mrb[38].mxu0 }
 0x2f0   :  { %v1861_v50 = vsub.f32 %v2699_v29, %v3779_v17  ;;  %v1049_v31 = vpop.f32.mrb[39].mxu0  ;;  %v1999_v29 = vadd.f32 0.0001, %v3719_v15 }
 0x2f1   :  { %v1860_v55 = vsub.f32 %v1049_v31, %v3788_v20 }
 0x2f3   :  { %v3915_v38 = vpop.f32.mrb[40].mxu0 }
 0x2f4   :  { %v3919_v18 = vpop.f32.mrb[41].mxu0 }
 0x2f7   :  { %v3923_v6 = vpop.f32.mrb[42].mxu0 }
 0x2f8   :  { %v3927_v19 = vpop.f32.mrb[43].mxu0 }
 0x2fb   :  { %v3931_v20 = vpop.f32.mrb[44].mxu0 }
 0x2fc   :  { %v3935_v53 = vpop.f32.mrb[45].mxu0 }
 0x2fd   :  { %4219 = vst [vmem:[#allocation23_spill] sm:$0xff] %v3935_v53 }
 0x2ff   :  { %v3939_v31 = vpop.f32.mrb[46].mxu0 }
 0x300   :  { %4220 = vst [vmem:[#allocation24_spill] sm:$0xff] %v3939_v31  ;;  %v3943_v37 = vpop.f32.mrb[47].mxu0 }
 0x303   :  { %v2774_v10 = vpop.f32.mrb[48].mxu0 }
 0x304   :  { %v1871_v1 = vsub.f32 %v2774_v10, %v3703_v58  ;;  %v1373_v63 = vpop.f32.mrb[49].mxu0 }
 0x305   :  { %v1870_v57 = vsub.f32 %v1373_v63, %v3712_v3 }
 0x306   :  { %v2015_v47 = vadd.f32 %v1871_v1, %v1855_v36 }
 0x307   :  { %v2014_v30 = vadd.f32 %v1870_v57, %v1854_v8  ;;  %v2777_v46 = vpop.f32.mrb[50].mxu0  ;;  %v2001_v8 = vadd.f32 0.0001, %v3745_v4 }
 0x308   :  { %v2031_v26 = vadd.f32 0.0009, %v2015_v47  ;;  %v1873_v53 = vsub.f32 %v2777_v46, %v3729_v27  ;;  %v1383_v34 = vpop.f32.mrb[51].mxu0  ;;  %v2000_v27 = vadd.f32 0.0001, %v3749_v44 }
 0x309   :  { %v2030_v31 = vadd.f32 0.0009, %v2014_v30  ;;  %v1872_v17 = vsub.f32 %v1383_v34, %v3738_v43 }
 0x30a   :  { %v3953_v35 = vmul.f32 %v2031_v26, %v1999_v29  ;;  %v2017_v58 = vadd.f32 %v1873_v53, %v1857_v22 }
 0x30b   :  { %v3955_v10 = vmul.f32 %v2030_v31, %v1998_v32  ;;  %v2016_v3 = vadd.f32 %v1872_v17, %v1856_v39  ;;  %v2780_v36 = vpop.f32.mrb[52].mxu0  ;;  %v2003_v39 = vadd.f32 0.0001, %v3771_v13 }
 0x30c   :  { %v2033_v63 = vadd.f32 0.0009, %v2017_v58  ;;  %v1875_v15 = vsub.f32 %v2780_v36, %v3755_v7  ;;  %v1393_v47 = vpop.f32.mrb[53].mxu0  ;;  %v2002_v7 = vadd.f32 0.0001, %v3775_v14 }
 0x30d   :  { %v2032_v46 = vadd.f32 0.0009, %v2016_v3  ;;  %v1874_v16 = vsub.f32 %v1393_v47, %v3764_v11 }
 0x30e   :  { %v3961_v30 = vmul.f32 %v2033_v63, %v2001_v8  ;;  %v2019_v43 = vadd.f32 %v1875_v15, %v1859_v25  ;;  %v1902_v8 = vmul.f32 2.0, %v3715_v5 }
 0x30f   :  { %v3963_v26 = vmul.f32 %v2032_v46, %v2000_v27  ;;  %v2018_v22 = vadd.f32 %v1874_v16, %v1858_v33  ;;  %v2783_v32 = vpop.f32.mrb[54].mxu0  ;;  %v2005_v33 = vadd.f32 0.0001, %v3797_v40  ;;  %v1905_v40 = vmul.f32 2.0, %v3732_v0 }
 0x310   :  { %v2035_v1 = vadd.f32 0.0009, %v2019_v43  ;;  %v1877_v4 = vsub.f32 %v2783_v32, %v3781_v51  ;;  %v1403_v17 = vpop.f32.mrb[55].mxu0  ;;  %v2004_v51 = vadd.f32 0.0001, %v3801_v41  ;;  %v4222_v41 = vsub.f32 %v3919_v18, %v3814_v61 }
 0x311   :  { %v2034_v57 = vadd.f32 0.0009, %v2018_v22  ;;  %v1876_v44 = vsub.f32 %v1403_v17, %v3790_v52  ;;  %v1903_v52 = vmul.f32 2.0, %v3706_v59  ;;  %v1904_v22 = vmul.f32 2.0, %v3741_v2 }
 0x312   :  { %v3969_v53 = vmul.f32 %v2035_v1, %v2003_v39  ;;  %v2021_v11 = vadd.f32 %v1877_v4, %v1861_v50  ;;  %v4221_v50 = vsub.f32 %v3915_v38, %v3805_v42  ;;  %v2006_v42 = vadd.f32 0.0001, %v3827_v21 }
 0x313   :  { %v3971_v29 = vmul.f32 %v2034_v57, %v2002_v7  ;;  %v2020_v25 = vadd.f32 %v1876_v44, %v1860_v55  ;;  %v2786_v31 = vpop.f32.mrb[56].mxu0  ;;  %v3994_v43 = vadd.f32 0.0001, %v1903_v52  ;;  %v4223_v61 = vsub.f32 %v3923_v6, %v3831_v24 }
 0x314   :  { %v2037_v34 = vadd.f32 0.0009, %v2021_v11  ;;  %v1879_v13 = vsub.f32 %v2786_v31, %v3807_v56  ;;  %v1413_v58 = vpop.f32.mrb[57].mxu0  ;;  %v4004_v39 = vadd.f32 0.0001, %v1905_v40  ;;  %v4224_v21 = vsub.f32 %v3927_v19, %v3840_v45 }
 0x315   :  { %v2036_v3 = vadd.f32 0.0009, %v2020_v25  ;;  %v1878_v14 = vsub.f32 %v1413_v58, %v3816_v62  ;;  %v2007_v62 = vadd.f32 0.0001, %v3823_v12  ;;  %v4002_v12 = vadd.f32 0.0001, %v1902_v8 }
 0x316   :  { %v3978_v36 = vmul.f32 %v2037_v34, %v2005_v33  ;;  %v2023_v55 = vadd.f32 %v1879_v13, %v4221_v50  ;;  %v2009_v4 = vadd.f32 0.0001, %v3849_v54  ;;  %v2008_v24 = vadd.f32 0.0001, %v3853_v60  ;;  %v4226_v33 = vld [vmem:[#allocation2_spill] sm:$0xff]  ;;  %v4227_v34 = vld [vmem:[#allocation13_spill] sm:$0xff] }
 0x317   :  { %v3985_v63 = vmul.f32 %v2036_v3, %v2004_v51  ;;  %v2022_v56 = vadd.f32 %v1878_v14, %v4222_v41  ;;  %v2789_v15 = vpop.f32.mrb[58].mxu0  ;;  %v2063_v6 = vadd.f32 1e-12, %v3953_v35  ;;  %v4016_v25 = vadd.f32 0.0001, %v1904_v22  ;;  %v4228_v35 = vld [vmem:[#allocation23_spill] sm:$0xff] }
 0x318   :  { %v2039_v47 = vadd.f32 0.0009, %v2023_v55  ;;  %v1881_v27 = vsub.f32 %v2789_v15, %v3833_v49  ;;  %v1423_v46 = vpop.f32.mrb[59].mxu0  ;;  %v2062_v31 = vadd.f32 1e-12, %v3955_v10  ;;  %v4225_v54 = vsub.f32 %v3931_v20, %v3857_v9  ;;  %v4229_v58 = vld [vmem:[#allocation11_spill] sm:$0xff] }
 0x319   :  { %v2038_v38 = vadd.f32 0.0009, %v2022_v56  ;;  %v1880_v16 = vsub.f32 %v1423_v46, %v3842_v48  ;;  %v2011_v13 = vadd.f32 0.0001, %v4227_v34  ;;  %v4230_v51 = vsub.f32 %v4228_v35, %v4229_v58  ;;  %v4231_v14 = vld [vmem:[#allocation3_spill] sm:$0xff]  ;;  %v4232_v10 = vld [vmem:[#allocation14_spill] sm:$0xff] }
 0x31a   :  { %v3997_v32 = vmul.f32 %v2039_v47, %v2007_v62  ;;  %v2025_v18 = vadd.f32 %v1881_v27, %v4223_v61  ;;  %v1906_v52 = vmul.f32 2.0, %v4231_v14  ;;  %v2010_v50 = vadd.f32 0.0001, %v4232_v10  ;;  %v4233_v8 = vld [vmem:[#allocation16_spill] sm:$0xff]  ;;  %v4234_v56 = vld [vmem:[#allocation19_spill] sm:$0xff]  ;;  %v4238_v22 = vld [vmem:[#allocation21_spill] sm:$0xff] }
 0x31b   :  { %v4006_v49 = vmul.f32 %v2038_v38, %v2006_v42  ;;  %v2024_v48 = vadd.f32 %v1880_v16, %v4224_v21  ;;  %v2792_v1 = vpop.f32.mrb[60].mxu0  ;;  %3062 = vrcp.f32 %v2063_v6  ;;  %v2065_v20 = vadd.f32 1e-12, %v3961_v30  ;;  %v4235_v27 = vld [vmem:[#allocation24_spill] sm:$0xff]  ;;  %v4236_v46 = vld [vmem:[#allocation15_spill] sm:$0xff]  ;;  %v4239_v30 = vld [vmem:[#allocation18_spill] sm:$0xff] }
 0x31c   :  { %v2041_v17 = vadd.f32 0.0009, %v2025_v18  ;;  %v1883_v7 = vsub.f32 %v2792_v1, %v3859_v23  ;;  %v1433_v57 = vpop.f32.mrb[61].mxu0  ;;  %v1907_v23 = vmul.f32 2.0, %v4226_v33  ;;  %3064 = vrcp.f32 %v2062_v31  ;;  %v4243_v34 = vld [vmem:[#allocation5_spill] sm:$0xff] }
 0x31d   :  { %v2040_v44 = vadd.f32 0.0009, %v2024_v48  ;;  %v1882_v11 = vsub.f32 %v1433_v57, %v3868_v28  ;;  %v2064_v62 = vadd.f32 1e-12, %v3963_v26  ;;  %v4237_v42 = vsub.f32 %v4235_v27, %v4236_v46  ;;  %v4242_v26 = vld [vmem:[#allocation22_spill] sm:$0xff] }
 0x31e   :  { %v4019_v45 = vmul.f32 %v2041_v17, %v2009_v4  ;;  %v2027_v19 = vadd.f32 %v1883_v7, %v4225_v54  ;;  %v4042_v16 = vadd.f32 0.0001, %v1907_v23  ;;  %v2013_v61 = vadd.f32 0.0001, %v4238_v22  ;;  %v4241_v4 = vld [vmem:[#allocation4_spill] sm:$0xff] }
 0x31f   :  { %v4026_v60 = vmul.f32 %v2040_v44, %v2008_v24  ;;  %v2026_v28 = vadd.f32 %v1882_v11, %v4230_v51  ;;  %v2795_v3 = vpop.f32.mrb[62].mxu0  ;;  %v4240_v21 = vsub.f32 %v3943_v37, %v4239_v30  ;;  %v1909_v17 = vmul.f32 2.0, %v4241_v4 }
 0x320   :  { %v2043_v55 = vadd.f32 0.0009, %v2027_v19  ;;  %v1885_v40 = vsub.f32 %v2795_v3, %v4233_v8  ;;  %v1443_v9 = vpop.f32.mrb[63].mxu0  ;;  %v2012_v7 = vadd.f32 0.0001, %v4242_v26  ;;  %3066 = vrcp.f32 %v2065_v20 }
 0x321   :  { %v2042_v41 = vadd.f32 0.0009, %v2026_v28  ;;  %v1884_v15 = vsub.f32 %v1443_v9, %v4234_v56  ;;  %v2067_v44 = vadd.f32 1e-12, %v3969_v53  ;;  %3068 = vrcp.f32 %v2064_v62  ;;  %v4244_v9 = vld [vmem:[#allocation6_spill] sm:$0xff] }
 0x322   :  { %v4037_v47 = vmul.f32 %v2043_v55, %v2011_v13  ;;  %v2029_v38 = vadd.f32 %v1885_v40, %v4237_v42  ;;  %v2066_v54 = vadd.f32 1e-12, %v3971_v29  ;;  %v4058_v23 = vadd.f32 0.0001, %v1906_v52 }
 0x323   :  { %v4045_v18 = vmul.f32 %v2042_v41, %v2010_v50  ;;  %v2028_v48 = vadd.f32 %v1884_v15, %v4240_v21  ;;  %v2858_v1 = vpop.f32.mrb[64].mxu0  ;;  %v1908_v13 = vmul.f32 2.0, %v4243_v34  ;;  %v4063_v51 = vadd.f32 0.0001, %v1909_v17 }
 0x324   :  { %v2045_v57 = vadd.f32 0.0009, %v2029_v38  ;;  %v1887_v24 = vsub.f32 %v2858_v1, %v3706_v59  ;;  %v1727_v6 = vpop.f32.mrb[65].mxu0  ;;  %3070 = vrcp.f32 %v2067_v44  ;;  %v2069_v29 = vadd.f32 1e-12, %v3978_v36 }
 0x325   :  { %v2044_v11 = vadd.f32 0.0009, %v2028_v48  ;;  %v1886_v31 = vsub.f32 %v1727_v6, %v3715_v5  ;;  %3072 = vrcp.f32 %v2066_v54  ;;  %v2068_v52 = vadd.f32 1e-12, %v3985_v63  ;;  %v3063_v8 = vpop.eup %3062  ;;  %v4246_v54 = vld [vmem:[#allocation8_spill] sm:$0xff] }
 0x326   :  { %v4056_v37 = vmul.f32 %v2045_v57, %v2013_v61  ;;  %v1935_v19 = vmul.f32 2.0, %v1887_v24  ;;  %v4070_v40 = vadd.f32 0.0001, %v1908_v13  ;;  %v1911_v20 = vmul.f32 2.0, %v4244_v9  ;;  %v3065_v15 = vpop.eup %3064 }
 0x327   :  { %v4061_v35 = vmul.f32 %v2044_v11, %v2012_v7  ;;  %v1934_v59 = vmul.f32 2.0, %v1886_v31  ;;  %v2861_v58 = vpop.f32.mrb[66].mxu0  ;;  %v2071_v36 = vadd.f32 1e-12, %v3997_v32  ;;  %3074 = vrcp.f32 %v2069_v29 }
 0x328   :  { %v1951_v53 = vadd.f32 0.0009, %v1935_v19  ;;  %v1889_v28 = vsub.f32 %v2861_v58, %v3732_v0  ;;  %v1737_v5 = vpop.f32.mrb[67].mxu0  ;;  %3076 = vrcp.f32 %v2068_v52  ;;  %v2070_v38 = vadd.f32 1e-12, %v4006_v49 }
 0x329   :  { %v1950_v3 = vadd.f32 0.0009, %v1934_v59  ;;  %v1888_v10 = vsub.f32 %v1737_v5, %v3741_v2  ;;  %v4083_v61 = vadd.f32 0.0001, %v1911_v20  ;;  %3078 = vrcp.f32 %v2071_v36 }
 0x32a   :  { %v1967_v50 = vmul.f32 %v1951_v53, %v3994_v43  ;;  %v1937_v55 = vmul.f32 2.0, %v1889_v28  ;;  %v3067_v22 = vpop.eup %3066  ;;  %v2073_v7 = vadd.f32 1e-12, %v4019_v45  ;;  %3080 = vrcp.f32 %v2070_v38 }
 0x32b   :  { %v1966_v0 = vmul.f32 %v1950_v3, %v4002_v12  ;;  %v1936_v41 = vmul.f32 2.0, %v1888_v10  ;;  %v2864_v56 = vpop.f32.mrb[68].mxu0  ;;  %v3069_v48 = vpop.eup %3068  ;;  %v2072_v44 = vadd.f32 1e-12, %v4026_v60  ;;  %v1913_v19 = vmul.f32 2.0, %v4246_v54 }
 0x32c   :  { %v2081_v62 = vmul.f32 %v3063_v8, %v1967_v50  ;;  %v1953_v2 = vadd.f32 0.0009, %v1937_v55  ;;  %v1891_v27 = vsub.f32 %v2864_v56, %v4226_v33  ;;  %v1747_v63 = vpop.f32.mrb[69].mxu0  ;;  %v4245_v33 = vld [vmem:[#allocation7_spill] sm:$0xff]  ;;  %v2075_v59 = vadd.f32 1e-12, %v4037_v47 }
 0x32d   :  { %v2079_v43 = vmul.f32 %v3065_v15, %v1966_v0  ;;  %v1952_v46 = vadd.f32 0.0009, %v1936_v41  ;;  %v1890_v42 = vsub.f32 %v1747_v63, %v4231_v14  ;;  %v1910_v30 = vmul.f32 2.0, %v4245_v33  ;;  %v4247_v55 = vld [vmem:[#allocation9_spill] sm:$0xff] }
 0x32e   :  { %2111 = vst.msk [vmem:[%s4178_s4 + $0x8] sm:$0xff] %vm212_vm0, %v2081_v62  ;;  %v1969_v32 = vmul.f32 %v1953_v2, %v4004_v39  ;;  %v1939_v12 = vmul.f32 2.0, %v1891_v27  ;;  %v3071_v31 = vpop.eup %3070  ;;  %3082 = vrcp.f32 %v2073_v7  ;;  %v2074_v10 = vadd.f32 1e-12, %v4045_v18 }
 0x32f   :  { %2110 = vst.msk [vmem:[%s4178_s4] sm:$0xff] %vm212_vm0, %v2079_v43  ;;  %v1968_v49 = vmul.f32 %v1952_v46, %v4016_v25  ;;  %v1938_v14 = vmul.f32 2.0, %v1890_v42  ;;  %v2867_v21 = vpop.f32.mrb[70].mxu0  ;;  %v3073_v13 = vpop.eup %3072  ;;  %3084 = vrcp.f32 %v2072_v44  ;;  %v1929_v50 = vadd.f32 0.0001, %v1913_v19  ;;  %v4248_v42 = vld [vmem:[#allocation10_spill] sm:$0xff] }
 0x330   :  { %v2085_v1 = vmul.f32 %v3067_v22, %v1969_v32  ;;  %v1955_v17 = vadd.f32 0.0009, %v1939_v12  ;;  %v1893_v39 = vsub.f32 %v2867_v21, %v4241_v4  ;;  %v1757_v26 = vpop.f32.mrb[71].mxu0  ;;  %v1926_v4 = vadd.f32 0.0001, %v1910_v30  ;;  %v4249_v32 = vld [vmem:[#allocation12_spill] sm:$0xff] }
 0x331   :  { %v2083_v57 = vmul.f32 %v3069_v48, %v1968_v49  ;;  %v1954_v24 = vadd.f32 0.0009, %v1938_v14  ;;  %v1892_v6 = vsub.f32 %v1757_v26, %v4243_v34  ;;  %v3075_v52 = vpop.eup %3074  ;;  %v1912_v8 = vmul.f32 2.0, %v4247_v55 }
 0x332   :  { %2113 = vst.msk [vmem:[%s4178_s4 + $0x18] sm:$0xff] %vm212_vm0, %v2085_v1  ;;  %v1971_v25 = vmul.f32 %v1955_v17, %v4042_v16  ;;  %v1941_v11 = vmul.f32 2.0, %v1893_v39  ;;  %v3077_v0 = vpop.eup %3076  ;;  %3086 = vrcp.f32 %v2075_v59  ;;  %v2077_v36 = vadd.f32 1e-12, %v4056_v37 }
 0x333   :  { %2112 = vst.msk [vmem:[%s4178_s4 + $0x10] sm:$0xff] %vm212_vm0, %v2083_v57  ;;  %v1970_v45 = vmul.f32 %v1954_v24, %v4058_v23  ;;  %v1940_v60 = vmul.f32 2.0, %v1892_v6  ;;  %v2870_v34 = vpop.f32.mrb[72].mxu0  ;;  %v3079_v63 = vpop.eup %3078  ;;  %3088 = vrcp.f32 %v2074_v10  ;;  %v2076_v43 = vadd.f32 1e-12, %v4061_v35 }
 0x334   :  { %v2089_v58 = vmul.f32 %v3071_v31, %v1971_v25  ;;  %v1957_v53 = vadd.f32 0.0009, %v1941_v11  ;;  %v1895_v16 = vsub.f32 %v2870_v34, %v4244_v9  ;;  %v1767_v28 = vpop.f32.mrb[73].mxu0  ;;  %v1915_v38 = vmul.f32 2.0, %v4248_v42  ;;  %v4250_v31 = vld [vmem:[#allocation17_spill] sm:$0xff]  ;;  %v4251_v34 = vld [vmem:[#allocation20_spill] sm:$0xff] }
 0x335   :  { %v2087_v5 = vmul.f32 %v3073_v13, %v1970_v45  ;;  %v1956_v29 = vadd.f32 0.0009, %v1940_v60  ;;  %v1894_v3 = vsub.f32 %v1767_v28, %v4245_v33  ;;  %v1914_v37 = vmul.f32 2.0, %v4249_v32  ;;  %v3081_v33 = vpop.eup %3080 }
 0x336   :  { %2115 = vst.msk [vmem:[%s4178_s4 + $0x28] sm:$0xff] %vm212_vm0, %v2089_v58  ;;  %v1973_v47 = vmul.f32 %v1957_v53, %v4063_v51  ;;  %v1943_v23 = vmul.f32 2.0, %v1895_v16  ;;  %v1928_v30 = vadd.f32 0.0001, %v1912_v8  ;;  %3090 = vrcp.f32 %v2077_v36 }
 0x337   :  { %2114 = vst.msk [vmem:[%s4178_s4 + $0x20] sm:$0xff] %vm212_vm0, %v2087_v5  ;;  %v1972_v9 = vmul.f32 %v1956_v29, %v4070_v40  ;;  %v1942_v18 = vmul.f32 2.0, %v1894_v3  ;;  %v2873_v20 = vpop.f32.mrb[80].mxu1  ;;  %3092 = vrcp.f32 %v2076_v43  ;;  %v1931_v57 = vadd.f32 0.0001, %v1915_v38 }
 0x338   :  { %v2093_v41 = vmul.f32 %v3075_v52, %v1973_v47  ;;  %v1959_v56 = vadd.f32 0.0009, %v1943_v23  ;;  %v1897_v51 = vsub.f32 %v2873_v20, %v4246_v54  ;;  %v1777_v15 = vpop.f32.mrb[81].mxu1  ;;  %v3083_v7 = vpop.eup %3082  ;;  %v1930_v24 = vadd.f32 0.0001, %v1914_v37 }
 0x339   :  { %v2091_v62 = vmul.f32 %v3077_v0, %v1972_v9  ;;  %v1958_v2 = vadd.f32 0.0009, %v1942_v18  ;;  %v1896_v27 = vsub.f32 %v1777_v15, %v4247_v55  ;;  %v3085_v11 = vpop.eup %3084  ;;  %v1916_v13 = vmul.f32 2.0, %v4251_v34 }
 0x33a   :  { %2117 = vst.msk [vmem:[%s4178_s4 + $0x38] sm:$0xff] %vm212_vm0, %v2093_v41  ;;  %v1975_v40 = vmul.f32 %v1959_v56, %v4083_v61  ;;  %v1945_v46 = vmul.f32 2.0, %v1897_v51 }
 0x33b   :  { %2116 = vst.msk [vmem:[%s4178_s4 + $0x30] sm:$0xff] %vm212_vm0, %v2091_v62  ;;  %v1974_v12 = vmul.f32 %v1958_v2, %v1926_v4  ;;  %v1944_v22 = vmul.f32 2.0, %v1896_v27  ;;  %v2876_v35 = vpop.f32.mrb[82].mxu1  ;;  %v1917_v4 = vmul.f32 2.0, %v4250_v31 }
 0x33c   :  { %v2097_v49 = vmul.f32 %v3079_v63, %v1975_v40  ;;  %v1961_v14 = vadd.f32 0.0009, %v1945_v46  ;;  %v1899_v21 = vsub.f32 %v2876_v35, %v4248_v42  ;;  %v1787_v61 = vpop.f32.mrb[83].mxu1  ;;  %v3087_v16 = vpop.eup %3086 }
 0x33d   :  { %v2095_v48 = vmul.f32 %v3081_v33, %v1974_v12  ;;  %v1960_v1 = vadd.f32 0.0009, %v1944_v22  ;;  %v1898_v17 = vsub.f32 %v1787_v61, %v4249_v32  ;;  %v3089_v10 = vpop.eup %3088  ;;  %v1933_v47 = vadd.f32 0.0001, %v1917_v4 }
 0x33e   :  { %2119 = vst.msk [vmem:[%s4178_s4 + $0x48] sm:$0xff] %vm212_vm0, %v2097_v49  ;;  %v1977_v39 = vmul.f32 %v1961_v14, %v1929_v50  ;;  %v1947_v26 = vmul.f32 2.0, %v1899_v21  ;;  %v1932_v50 = vadd.f32 0.0001, %v1916_v13 }
 0x33f   :  { %2118 = vst.msk [vmem:[%s4178_s4 + $0x40] sm:$0xff] %vm212_vm0, %v2095_v48  ;;  %v1976_v6 = vmul.f32 %v1960_v1, %v1928_v30  ;;  %v1946_v44 = vmul.f32 2.0, %v1898_v17  ;;  %v2879_v25 = vpop.f32.mrb[84].mxu1 }
 0x340   :  { %v2101_v54 = vmul.f32 %v3083_v7, %v1977_v39  ;;  %v1963_v19 = vadd.f32 0.0009, %v1947_v26  ;;  %v1901_v45 = vsub.f32 %v2879_v25, %v4250_v31  ;;  %v1797_v60 = vpop.f32.mrb[85].mxu1  ;;  %v3091_v18 = vpop.eup %3090 }
 0x341   :  { %v2099_v59 = vmul.f32 %v3085_v11, %v1976_v6  ;;  %v1962_v58 = vadd.f32 0.0009, %v1946_v44  ;;  %v1900_v53 = vsub.f32 %v1797_v60, %v4251_v34  ;;  %v3093_v0 = vpop.eup %3092 }
 0x342   :  { %2121 = vst.msk [vmem:[%s4178_s4 + $0x58] sm:$0xff] %vm212_vm0, %v2101_v54  ;;  %v1979_v28 = vmul.f32 %v1963_v19, %v1931_v57  ;;  %v1949_v5 = vmul.f32 2.0, %v1901_v45 }
 0x343   :  { %2120 = vst.msk [vmem:[%s4178_s4 + $0x50] sm:$0xff] %vm212_vm0, %v2099_v59  ;;  %v1978_v29 = vmul.f32 %v1962_v58, %v1930_v24  ;;  %v1948_v3 = vmul.f32 2.0, %v1900_v53 }
 0x344   :  { %v2105_v23 = vmul.f32 %v3087_v16, %v1979_v28  ;;  %v1965_v52 = vadd.f32 0.0009, %v1949_v5 }
 0x345   :  { %v2103_v55 = vmul.f32 %v3089_v10, %v1978_v29  ;;  %v1964_v8 = vadd.f32 0.0009, %v1948_v3 }
 0x346   :  { %2123 = vst.msk [vmem:[%s4178_s4 + $0x68] sm:$0xff] %vm212_vm0, %v2105_v23  ;;  %v1981_v9 = vmul.f32 %v1965_v52, %v1933_v47 }
 0x347   :  { %2122 = vst.msk [vmem:[%s4178_s4 + $0x60] sm:$0xff] %vm212_vm0, %v2103_v55  ;;  %v1980_v20 = vmul.f32 %v1964_v8, %v1932_v50 }
 0x348   :  { %v2109_v41 = vmul.f32 %v3091_v18, %v1981_v9 }
 0x349   :  { %v2107_v56 = vmul.f32 %v3093_v0, %v1980_v20 }
 0x34a   :  { %2125 = vst.msk [vmem:[%s4178_s4 + $0x78] sm:$0xff] %vm212_vm0, %v2109_v41 }
 0x34b   :  { %2124 = vst.msk [vmem:[%s4178_s4 + $0x70] sm:$0xff] %vm212_vm0, %v2107_v56 }

</bundles_post_ra>
